<compile_context>
chip_gen: v7x
topology: tpu7x:2x2x1
jax: 0.10.0
libtpu: 0.0.40
codegen_flags: <defaults>
</compile_context>

<pallas_src>
import jax
import jax.numpy as jnp
from jax.experimental import pallas as pl
from jax.experimental.pallas import tpu as pltpu

FEATURE_CONFIGS = {
    'feat_ending': 3, 'feat_strat_cnt': 3, 'feat_command': 3, 'feat_attack': 3,
    'feat_power': 3, 'feat_distance': 3, 'feat_indirect': 3,
}
FEAT_NAMES = list(FEATURE_CONFIGS.keys())
N_FEATS = len(FEAT_NAMES)                       # 7
N_CLASSES = 3
FEAT_TOTAL = sum(FEATURE_CONFIGS.values())      # 21
OUT_W = 128                                     # lane-dense output slab width
SCORE_COL = FEAT_TOTAL                          # column 21 carries the score
TB_MAX = 512                                    # batch tile (rows per grid step)


def multitask_head_kernel(mean_ref, pw_ref, pb_ref,
                          w1_ref, b1_ref, w2_ref, b2_ref,
                          wh_ref, bh_ref, gsum_ref,
                          ws1p_ref, ws1f_ref, bs1_ref,
                          ws2_ref, bs2_ref,
                          out_ref):
    # --- BERT pooler: tanh(mean @ Wp + bp)  (tanh -> EUP slot) --------------
    pooled_f32 = jnp.tanh(
        jnp.dot(mean_ref[...], pw_ref[...], preferred_element_type=jnp.float32)
        + pb_ref[...])
    pooled = pooled_f32.astype(jnp.bfloat16)                     # (TB, H)

    # --- feature_interaction: Linear(H,H/2) -> ReLU -> Dropout(id) -> Linear
    h = jnp.dot(pooled, w1_ref[...], preferred_element_type=jnp.float32) + b1_ref[...]
    h = jnp.maximum(h, 0.0).astype(jnp.bfloat16)
    inter = (jnp.dot(h, w2_ref[...], preferred_element_type=jnp.float32)
             + b2_ref[...]).astype(jnp.bfloat16)                 # (TB, H/2)

    # --- 7 feature heads fused into one 128-lane padded matmul --------------
    # cols 0..20 = real logits, cols 21..127 = 0 (zero-padded weights/bias)
    logits = (jnp.dot(inter, wh_ref[...], preferred_element_type=jnp.float32)
              + bh_ref[...])                                     # (TB, 128) f32

    # --- per-head softmax: one exp + block-diag group-sum matmul (bf16) -----
    # Row max (>= 0 because of the zero padding) is a safe shared shift for
    # every 3-wide group; softmax is shift-invariant within a group.
    mx = jnp.max(logits, axis=-1, keepdims=True)
    e = jnp.exp(logits - mx)                                     # single EUP pass
    # gsum is block-diagonal (3x3 ones per head) on cols 0..20 and identity
    # on the padding cols; entries are exactly 0/1 so bf16 is lossless.
    s = jnp.dot(e.astype(jnp.bfloat16), gsum_ref[...],
                preferred_element_type=jnp.float32)
    # Guard against exp-underflow (padding cols when mx > ~88, or a head whose
    # logits sit far below the global max): avoids inf from reciprocal and the
    # resulting NaN*0 in the score matmul.
    s = jnp.maximum(s, 1e-30)
    probs = (e * pl.reciprocal(s, approx=True)).astype(jnp.bfloat16)  # (TB,128)

    # --- score_head on concat([pooled, all_probs]) as a split matmul --------
    s1 = (jnp.dot(pooled, ws1p_ref[...], preferred_element_type=jnp.float32)
          + jnp.dot(probs, ws1f_ref[...], preferred_element_type=jnp.float32)
          + bs1_ref[...])
    s1 = jnp.maximum(s1, 0.0).astype(jnp.bfloat16)               # (TB, 256)
    # ws2 is padded to (256,128): only column SCORE_COL is non-zero.
    score128 = (jnp.dot(s1, ws2_ref[...], preferred_element_type=jnp.float32)
                + bs2_ref[...])                                  # (TB, 128)

    # logits cols 21..127 == 0, score128 cols != 21 == 0  -> just add.
    out_ref[...] = logits + score128                             # full-width vst


def make_params(key, vocab_size, hidden_size):
    h = hidden_size
    h2 = hidden_size // 2
    ks = jax.random.split(key, 12)

    def init(k, shape, scale=0.05):
        return (scale * jax.random.normal(k, shape)).astype(jnp.float32)

    # Padded / fused weights, bf16 for the MXU; biases stay f32.
    wh = init(ks[4], (h2, FEAT_TOTAL))
    wh_pad = jnp.zeros((h2, OUT_W), jnp.float32).at[:, :FEAT_TOTAL].set(wh)

    ws1f = init(ks[6], (FEAT_TOTAL, 256))
    ws1f_pad = jnp.zeros((OUT_W, 256), jnp.float32).at[:FEAT_TOTAL, :].set(ws1f)

    ws2 = init(ks[7], (256, 1))
    ws2_pad = jnp.zeros((256, OUT_W), jnp.float32).at[:, SCORE_COL:SCORE_COL + 1].set(ws2)

    # Block-diagonal group-sum matrix (+ identity on the padding block).
    # Entries are exactly 0/1 -> bf16 storage is lossless.
    idx = jnp.arange(OUT_W)
    valid = idx < FEAT_TOTAL
    same_group = (idx[:, None] // N_CLASSES == idx[None, :] // N_CLASSES) \
        & valid[:, None] & valid[None, :]
    pad_eye = (idx[:, None] == idx[None, :]) & (~valid[:, None])
    gsum = (same_group | pad_eye).astype(jnp.float32)

    params = {
        # surrogate encoder (plain-JAX glue) -- bf16 to halve HBM traffic
        'embedding': init(ks[0], (vocab_size, h)).astype(jnp.bfloat16),
        # pooler (runs inside the kernel)
        'pooler_w': init(ks[1], (h, h)).astype(jnp.bfloat16),
        'pooler_b': jnp.zeros((1, h), jnp.float32),
        # feature_interaction
        'w1': init(ks[2], (h, h2)).astype(jnp.bfloat16),
        'b1': jnp.zeros((1, h2), jnp.float32),
        'w2': init(ks[3], (h2, h2)).astype(jnp.bfloat16),
        'b2': jnp.zeros((1, h2), jnp.float32),
        # fused + padded feature heads
        'wh': wh_pad.astype(jnp.bfloat16),
        'bh': jnp.zeros((1, OUT_W), jnp.float32),
        'gsum': gsum.astype(jnp.bfloat16),
        # score_head layer 1 (split concat) and padded layer 2
        'ws1p': init(ks[5], (h, 256)).astype(jnp.bfloat16),
        'ws1f': ws1f_pad.astype(jnp.bfloat16),
        'bs1': jnp.zeros((1, 256), jnp.float32),
        'ws2': ws2_pad.astype(jnp.bfloat16),
        'bs2': jnp.zeros((1, OUT_W), jnp.float32),
    }
    return params


def _round_up(x, m):
    return ((x + m - 1) // m) * m


def _head_call(tb, n_blocks, H, H2, single_buffer_weights):
    """Build the pallas_call for the fused head kernel."""
    tiled = lambda i: (i, 0)      # activation / output tiles follow the grid
    resident = lambda i: (0, 0)   # weights stay VMEM-resident across steps

    wkw = {}
    if single_buffer_weights:
        # Constant index_map -> DMA'd once; no need for a second buffer.
        wkw = dict(pipeline_mode=pl.Buffered(1))

    def wspec(shape):
        return pl.BlockSpec(shape, resident, **wkw)

    return pl.pallas_call(
        multitask_head_kernel,
        grid=(n_blocks,),
        out_shape=jax.ShapeDtypeStruct((n_blocks * tb, OUT_W), jnp.float32),
        in_specs=[
            pl.BlockSpec((tb, H), tiled),   # mean
            wspec((H, H)),                  # pooler_w
            wspec((1, H)),                  # pooler_b
            wspec((H, H2)),                 # w1
            wspec((1, H2)),                 # b1
            wspec((H2, H2)),                # w2
            wspec((1, H2)),                 # b2
            wspec((H2, OUT_W)),             # wh (padded)
            wspec((1, OUT_W)),              # bh (padded)
            wspec((OUT_W, OUT_W)),          # gsum (bf16, 0/1)
            wspec((H, 256)),                # ws1p
            wspec((OUT_W, 256)),            # ws1f (padded)
            wspec((1, 256)),                # bs1
            wspec((256, OUT_W)),            # ws2 (padded)
            wspec((1, OUT_W)),              # bs2 (padded)
        ],
        out_specs=pl.BlockSpec((tb, OUT_W), tiled),
        compiler_params=pltpu.CompilerParams(
            dimension_semantics=("parallel",),
            vmem_limit_bytes=32 * 1024 * 1024),
    )


def multitask_forward(input_ids, attention_mask, params):
    # Surrogate encoder: bf16 embedding lookup + masked mean (f32 accumulate).
    emb = params['embedding'][input_ids]                          # (B, S, H) bf16
    mask_bf = attention_mask.astype(jnp.bfloat16)                 # (B, S)
    summed = jnp.einsum('bsh,bs->bh', emb, mask_bf,
                        preferred_element_type=jnp.float32)       # (B, H) f32
    denom = jnp.maximum(attention_mask.sum(axis=1).astype(jnp.float32), 1.0)
    mean_bf = (summed / denom[:, None]).astype(jnp.bfloat16)      # (B, H)

    B, H = mean_bf.shape
    H2 = H // 2

    # Batch tile: >= 8 rows (MXU sublane granularity), and aim for >= 2 grid
    # blocks so the "parallel" axis can shard across v7x's 2 TensorCores.
    tb = max(8, min(TB_MAX, _round_up(-(-B // 2), 8)))
    n_blocks = -(-B // tb)
    Bp = n_blocks * tb
    if Bp != B:
        mean_bf = jnp.pad(mean_bf, ((0, Bp - B), (0, 0)))

    args = (mean_bf,
            params['pooler_w'], params['pooler_b'],
            params['w1'], params['b1'], params['w2'], params['b2'],
            params['wh'], params['bh'], params['gsum'],
            params['ws1p'], params['ws1f'], params['bs1'],
            params['ws2'], params['bs2'])

    try:
        out = _head_call(tb, n_blocks, H, H2, single_buffer_weights=True)(*args)
    except Exception:
        # Fallback for jax versions where pipeline_mode=pl.Buffered(1) is not
        # supported on the top-level pallas_call grid.
        out = _head_call(tb, n_blocks, H, H2, single_buffer_weights=False)(*args)

    logits = out[:B, :FEAT_TOTAL]
    score = out[:B, SCORE_COL]
    feature_logits = {
        name: logits[:, i * N_CLASSES:(i + 1) * N_CLASSES]
        for i, name in enumerate(FEAT_NAMES)
    }
    return feature_logits, score


if __name__ == "__main__":
    key = jax.random.PRNGKey(0)
    k_param, k_ids, k_mask = jax.random.split(key, 3)

    batch, seq, vocab, hidden = 2, 8, 64, 32
    params = make_params(k_param, vocab, hidden)

    input_ids = jax.random.randint(k_ids, (batch, seq), 0, vocab, dtype=jnp.int32)
    attention_mask = jnp.ones((batch, seq), dtype=jnp.int32)

    feature_logits, score = multitask_forward(input_ids, attention_mask, params)
    jax.block_until_ready(score)
    for v in feature_logits.values():
        jax.block_until_ready(v)

    assert score.shape == (batch,)
    for name in FEAT_NAMES:
        assert feature_logits[name].shape == (batch, FEATURE_CONFIGS[name])
        assert bool(jnp.all(jnp.isfinite(feature_logits[name])))
    assert bool(jnp.all(jnp.isfinite(score)))
    print("KERNEL_OK")
</pallas_src>

<mosaic_0001>
module attributes {stable_mosaic.version = 11 : i64} {
  func.func @multitask_head_kernel(%arg0: i32, %arg1: memref<8x32xbf16, #tpu.memory_space<vmem>>, %arg2: memref<32x32xbf16, #tpu.memory_space<vmem>>, %arg3: memref<1x32xf32, #tpu.memory_space<vmem>>, %arg4: memref<32x16xbf16, #tpu.memory_space<vmem>>, %arg5: memref<1x16xf32, #tpu.memory_space<vmem>>, %arg6: memref<16x16xbf16, #tpu.memory_space<vmem>>, %arg7: memref<1x16xf32, #tpu.memory_space<vmem>>, %arg8: memref<16x128xbf16, #tpu.memory_space<vmem>>, %arg9: memref<1x128xf32, #tpu.memory_space<vmem>>, %arg10: memref<128x128xbf16, #tpu.memory_space<vmem>>, %arg11: memref<32x256xbf16, #tpu.memory_space<vmem>>, %arg12: memref<128x256xbf16, #tpu.memory_space<vmem>>, %arg13: memref<1x256xf32, #tpu.memory_space<vmem>>, %arg14: memref<256x128xbf16, #tpu.memory_space<vmem>>, %arg15: memref<1x128xf32, #tpu.memory_space<vmem>>, %arg16: memref<8x128xf32, #tpu.memory_space<vmem>>) attributes {dimension_semantics = [#tpu.dimension_semantics<parallel>], iteration_bounds = array<i64: 1>, scalar_prefetch = 0 : i64, scratch_operands = 0 : i64, tpu.core_type = #tpu.core_type<tc>, window_params = [{transform_indices = @transform_0, window_bounds = array<i64: 8, 32>}, {pipeline_mode = #tpu.pipeline_mode<synchronous>, transform_indices = @transform_1, window_bounds = array<i64: 32, 32>}, {pipeline_mode = #tpu.pipeline_mode<synchronous>, transform_indices = @transform_2, window_bounds = array<i64: 1, 32>}, {pipeline_mode = #tpu.pipeline_mode<synchronous>, transform_indices = @transform_3, window_bounds = array<i64: 32, 16>}, {pipeline_mode = #tpu.pipeline_mode<synchronous>, transform_indices = @transform_4, window_bounds = array<i64: 1, 16>}, {pipeline_mode = #tpu.pipeline_mode<synchronous>, transform_indices = @transform_5, window_bounds = array<i64: 16, 16>}, {pipeline_mode = #tpu.pipeline_mode<synchronous>, transform_indices = @transform_6, window_bounds = array<i64: 1, 16>}, {pipeline_mode = #tpu.pipeline_mode<synchronous>, transform_indices = @transform_7, window_bounds = array<i64: 16, 128>}, {pipeline_mode = #tpu.pipeline_mode<synchronous>, transform_indices = @transform_8, window_bounds = array<i64: 1, 128>}, {pipeline_mode = #tpu.pipeline_mode<synchronous>, transform_indices = @transform_9, window_bounds = array<i64: 128, 128>}, {pipeline_mode = #tpu.pipeline_mode<synchronous>, transform_indices = @transform_10, window_bounds = array<i64: 32, 256>}, {pipeline_mode = #tpu.pipeline_mode<synchronous>, transform_indices = @transform_11, window_bounds = array<i64: 128, 256>}, {pipeline_mode = #tpu.pipeline_mode<synchronous>, transform_indices = @transform_12, window_bounds = array<i64: 1, 256>}, {pipeline_mode = #tpu.pipeline_mode<synchronous>, transform_indices = @transform_13, window_bounds = array<i64: 256, 128>}, {pipeline_mode = #tpu.pipeline_mode<synchronous>, transform_indices = @transform_14, window_bounds = array<i64: 1, 128>}, {transform_indices = @transform_15, window_bounds = array<i64: 8, 128>}]} {
    %c0 = arith.constant 0 : index
    %c0_0 = arith.constant 0 : index
    %0 = vector.load %arg1[%c0, %c0_0] : memref<8x32xbf16, #tpu.memory_space<vmem>>, vector<8x32xbf16>
    %c0_1 = arith.constant 0 : index
    %c0_2 = arith.constant 0 : index
    %1 = vector.load %arg2[%c0_1, %c0_2] : memref<32x32xbf16, #tpu.memory_space<vmem>>, vector<32x32xbf16>
    %cst = arith.constant dense<0.000000e+00> : vector<8x32xf32>
    %2 = tpu.matmul %0, %1, %cst {dimension_numbers = #tpu.dot_dimension_numbers<[1], [0], [0], [1], [0, 0, 1, 1], [], []>} : vector<8x32xbf16>, vector<32x32xbf16>, vector<8x32xf32> -> vector<8x32xf32>
    %c0_3 = arith.constant 0 : index
    %c0_4 = arith.constant 0 : index
    %3 = vector.load %arg3[%c0_3, %c0_4] : memref<1x32xf32, #tpu.memory_space<vmem>>, vector<1x32xf32>
    %4 = vector.broadcast %3 : vector<1x32xf32> to vector<8x32xf32>
    %5 = arith.addf %2, %4 : vector<8x32xf32>
    %6 = math.tanh %5 : vector<8x32xf32>
    %7 = arith.truncf %6 : vector<8x32xf32> to vector<8x32xbf16>
    %c0_5 = arith.constant 0 : index
    %c0_6 = arith.constant 0 : index
    %8 = vector.load %arg4[%c0_5, %c0_6] : memref<32x16xbf16, #tpu.memory_space<vmem>>, vector<32x16xbf16>
    %cst_7 = arith.constant dense<0.000000e+00> : vector<8x16xf32>
    %9 = tpu.matmul %7, %8, %cst_7 {dimension_numbers = #tpu.dot_dimension_numbers<[1], [0], [0], [1], [0, 0, 1, 1], [], []>} : vector<8x32xbf16>, vector<32x16xbf16>, vector<8x16xf32> -> vector<8x16xf32>
    %c0_8 = arith.constant 0 : index
    %c0_9 = arith.constant 0 : index
    %10 = vector.load %arg5[%c0_8, %c0_9] : memref<1x16xf32, #tpu.memory_space<vmem>>, vector<1x16xf32>
    %11 = vector.broadcast %10 : vector<1x16xf32> to vector<8x16xf32>
    %12 = arith.addf %9, %11 : vector<8x16xf32>
    %cst_10 = arith.constant 0.000000e+00 : f32
    %13 = vector.broadcast %cst_10 : f32 to vector<8x16xf32>
    %14 = arith.maximumf %12, %13 : vector<8x16xf32>
    %15 = arith.truncf %14 : vector<8x16xf32> to vector<8x16xbf16>
    %c0_11 = arith.constant 0 : index
    %c0_12 = arith.constant 0 : index
    %16 = vector.load %arg6[%c0_11, %c0_12] : memref<16x16xbf16, #tpu.memory_space<vmem>>, vector<16x16xbf16>
    %cst_13 = arith.constant dense<0.000000e+00> : vector<8x16xf32>
    %17 = tpu.matmul %15, %16, %cst_13 {dimension_numbers = #tpu.dot_dimension_numbers<[1], [0], [0], [1], [0, 0, 1, 1], [], []>} : vector<8x16xbf16>, vector<16x16xbf16>, vector<8x16xf32> -> vector<8x16xf32>
    %c0_14 = arith.constant 0 : index
    %c0_15 = arith.constant 0 : index
    %18 = vector.load %arg7[%c0_14, %c0_15] : memref<1x16xf32, #tpu.memory_space<vmem>>, vector<1x16xf32>
    %19 = vector.broadcast %18 : vector<1x16xf32> to vector<8x16xf32>
    %20 = arith.addf %17, %19 : vector<8x16xf32>
    %21 = arith.truncf %20 : vector<8x16xf32> to vector<8x16xbf16>
    %c0_16 = arith.constant 0 : index
    %c0_17 = arith.constant 0 : index
    %22 = vector.load %arg8[%c0_16, %c0_17] : memref<16x128xbf16, #tpu.memory_space<vmem>>, vector<16x128xbf16>
    %cst_18 = arith.constant dense<0.000000e+00> : vector<8x128xf32>
    %23 = tpu.matmul %21, %22, %cst_18 {dimension_numbers = #tpu.dot_dimension_numbers<[1], [0], [0], [1], [0, 0, 1, 1], [], []>} : vector<8x16xbf16>, vector<16x128xbf16>, vector<8x128xf32> -> vector<8x128xf32>
    %c0_19 = arith.constant 0 : index
    %c0_20 = arith.constant 0 : index
    %24 = vector.load %arg9[%c0_19, %c0_20] : memref<1x128xf32, #tpu.memory_space<vmem>>, vector<1x128xf32>
    %25 = vector.broadcast %24 : vector<1x128xf32> to vector<8x128xf32>
    %26 = arith.addf %23, %25 : vector<8x128xf32>
    %cst_21 = arith.constant dense<0xFF800000> : vector<8xf32>
    %27 = vector.multi_reduction <maximumf>, %26, %cst_21 [1] : vector<8x128xf32> to vector<8xf32>
    %28 = vector.shape_cast %27 : vector<8xf32> to vector<8x1xf32>
    %29 = vector.broadcast %28 : vector<8x1xf32> to vector<8x128xf32>
    %30 = arith.subf %26, %29 : vector<8x128xf32>
    %31 = math.exp %30 : vector<8x128xf32>
    %32 = arith.truncf %31 : vector<8x128xf32> to vector<8x128xbf16>
    %c0_22 = arith.constant 0 : index
    %c0_23 = arith.constant 0 : index
    %33 = vector.load %arg10[%c0_22, %c0_23] : memref<128x128xbf16, #tpu.memory_space<vmem>>, vector<128x128xbf16>
    %cst_24 = arith.constant dense<0.000000e+00> : vector<8x128xf32>
    %34 = tpu.matmul %32, %33, %cst_24 {dimension_numbers = #tpu.dot_dimension_numbers<[1], [0], [0], [1], [0, 0, 1, 1], [], []>} : vector<8x128xbf16>, vector<128x128xbf16>, vector<8x128xf32> -> vector<8x128xf32>
    %cst_25 = arith.constant 1.000000e-30 : f32
    %35 = vector.broadcast %cst_25 : f32 to vector<8x128xf32>
    %36 = arith.maximumf %34, %35 : vector<8x128xf32>
    %37 = tpu.reciprocal %36 {approx = true} : vector<8x128xf32> -> vector<8x128xf32>
    %38 = arith.mulf %31, %37 : vector<8x128xf32>
    %39 = arith.truncf %38 : vector<8x128xf32> to vector<8x128xbf16>
    %c0_26 = arith.constant 0 : index
    %c0_27 = arith.constant 0 : index
    %40 = vector.load %arg11[%c0_26, %c0_27] : memref<32x256xbf16, #tpu.memory_space<vmem>>, vector<32x256xbf16>
    %cst_28 = arith.constant dense<0.000000e+00> : vector<8x256xf32>
    %41 = tpu.matmul %7, %40, %cst_28 {dimension_numbers = #tpu.dot_dimension_numbers<[1], [0], [0], [1], [0, 0, 1, 1], [], []>} : vector<8x32xbf16>, vector<32x256xbf16>, vector<8x256xf32> -> vector<8x256xf32>
    %c0_29 = arith.constant 0 : index
    %c0_30 = arith.constant 0 : index
    %42 = vector.load %arg12[%c0_29, %c0_30] : memref<128x256xbf16, #tpu.memory_space<vmem>>, vector<128x256xbf16>
    %cst_31 = arith.constant dense<0.000000e+00> : vector<8x256xf32>
    %43 = tpu.matmul %39, %42, %cst_31 {dimension_numbers = #tpu.dot_dimension_numbers<[1], [0], [0], [1], [0, 0, 1, 1], [], []>} : vector<8x128xbf16>, vector<128x256xbf16>, vector<8x256xf32> -> vector<8x256xf32>
    %44 = arith.addf %41, %43 : vector<8x256xf32>
    %c0_32 = arith.constant 0 : index
    %c0_33 = arith.constant 0 : index
    %45 = vector.load %arg13[%c0_32, %c0_33] : memref<1x256xf32, #tpu.memory_space<vmem>>, vector<1x256xf32>
    %46 = vector.broadcast %45 : vector<1x256xf32> to vector<8x256xf32>
    %47 = arith.addf %44, %46 : vector<8x256xf32>
    %cst_34 = arith.constant 0.000000e+00 : f32
    %48 = vector.broadcast %cst_34 : f32 to vector<8x256xf32>
    %49 = arith.maximumf %47, %48 : vector<8x256xf32>
    %50 = arith.truncf %49 : vector<8x256xf32> to vector<8x256xbf16>
    %c0_35 = arith.constant 0 : index
    %c0_36 = arith.constant 0 : index
    %51 = vector.load %arg14[%c0_35, %c0_36] : memref<256x128xbf16, #tpu.memory_space<vmem>>, vector<256x128xbf16>
    %cst_37 = arith.constant dense<0.000000e+00> : vector<8x128xf32>
    %52 = tpu.matmul %50, %51, %cst_37 {dimension_numbers = #tpu.dot_dimension_numbers<[1], [0], [0], [1], [0, 0, 1, 1], [], []>} : vector<8x256xbf16>, vector<256x128xbf16>, vector<8x128xf32> -> vector<8x128xf32>
    %c0_38 = arith.constant 0 : index
    %c0_39 = arith.constant 0 : index
    %53 = vector.load %arg15[%c0_38, %c0_39] : memref<1x128xf32, #tpu.memory_space<vmem>>, vector<1x128xf32>
    %54 = vector.broadcast %53 : vector<1x128xf32> to vector<8x128xf32>
    %55 = arith.addf %52, %54 : vector<8x128xf32>
    %56 = arith.addf %26, %55 : vector<8x128xf32>
    %c0_40 = arith.constant 0 : index
    %c0_41 = arith.constant 0 : index
    %57 = vector.load %arg16[%c0_40, %c0_41] : memref<8x128xf32, #tpu.memory_space<vmem>>, vector<8x128xf32>
    tpu.vector_store %arg16[%c0_40, %c0_41], %56 {strides = array<i32>} : memref<8x128xf32, #tpu.memory_space<vmem>>, vector<8x128xf32>,
    return
  }
  func.func @transform_0(%arg0: i32) -> (i32, i32) {
    %c0_i32 = arith.constant 0 : i32
    %c0_i32_0 = arith.constant 0 : i32
    return %arg0, %c0_i32 : i32, i32
  }
  func.func @transform_1(%arg0: i32) -> (i32, i32) {
    %c0_i32 = arith.constant 0 : i32
    %c0_i32_0 = arith.constant 0 : i32
    %c0_i32_1 = arith.constant 0 : i32
    return %c0_i32, %c0_i32_0 : i32, i32
  }
  func.func @transform_2(%arg0: i32) -> (i32, i32) {
    %c0_i32 = arith.constant 0 : i32
    %c0_i32_0 = arith.constant 0 : i32
    %c0_i32_1 = arith.constant 0 : i32
    return %c0_i32, %c0_i32_0 : i32, i32
  }
  func.func @transform_3(%arg0: i32) -> (i32, i32) {
    %c0_i32 = arith.constant 0 : i32
    %c0_i32_0 = arith.constant 0 : i32
    %c0_i32_1 = arith.constant 0 : i32
    return %c0_i32, %c0_i32_0 : i32, i32
  }
  func.func @transform_4(%arg0: i32) -> (i32, i32) {
    %c0_i32 = arith.constant 0 : i32
    %c0_i32_0 = arith.constant 0 : i32
    %c0_i32_1 = arith.constant 0 : i32
    return %c0_i32, %c0_i32_0 : i32, i32
  }
  func.func @transform_5(%arg0: i32) -> (i32, i32) {
    %c0_i32 = arith.constant 0 : i32
    %c0_i32_0 = arith.constant 0 : i32
    %c0_i32_1 = arith.constant 0 : i32
    return %c0_i32, %c0_i32_0 : i32, i32
  }
  func.func @transform_6(%arg0: i32) -> (i32, i32) {
    %c0_i32 = arith.constant 0 : i32
    %c0_i32_0 = arith.constant 0 : i32
    %c0_i32_1 = arith.constant 0 : i32
    return %c0_i32, %c0_i32_0 : i32, i32
  }
  func.func @transform_7(%arg0: i32) -> (i32, i32) {
    %c0_i32 = arith.constant 0 : i32
    %c0_i32_0 = arith.constant 0 : i32
    %c0_i32_1 = arith.constant 0 : i32
    return %c0_i32, %c0_i32_0 : i32, i32
  }
  func.func @transform_8(%arg0: i32) -> (i32, i32) {
    %c0_i32 = arith.constant 0 : i32
    %c0_i32_0 = arith.constant 0 : i32
    %c0_i32_1 = arith.constant 0 : i32
    return %c0_i32, %c0_i32_0 : i32, i32
  }
  func.func @transform_9(%arg0: i32) -> (i32, i32) {
    %c0_i32 = arith.constant 0 : i32
    %c0_i32_0 = arith.constant 0 : i32
    %c0_i32_1 = arith.constant 0 : i32
    return %c0_i32, %c0_i32_0 : i32, i32
  }
  func.func @transform_10(%arg0: i32) -> (i32, i32) {
    %c0_i32 = arith.constant 0 : i32
    %c0_i32_0 = arith.constant 0 : i32
    %c0_i32_1 = arith.constant 0 : i32
    return %c0_i32, %c0_i32_0 : i32, i32
  }
  func.func @transform_11(%arg0: i32) -> (i32, i32) {
    %c0_i32 = arith.constant 0 : i32
    %c0_i32_0 = arith.constant 0 : i32
    %c0_i32_1 = arith.constant 0 : i32
    return %c0_i32, %c0_i32_0 : i32, i32
  }
  func.func @transform_12(%arg0: i32) -> (i32, i32) {
    %c0_i32 = arith.constant 0 : i32
    %c0_i32_0 = arith.constant 0 : i32
    %c0_i32_1 = arith.constant 0 : i32
    return %c0_i32, %c0_i32_0 : i32, i32
  }
  func.func @transform_13(%arg0: i32) -> (i32, i32) {
    %c0_i32 = arith.constant 0 : i32
    %c0_i32_0 = arith.constant 0 : i32
    %c0_i32_1 = arith.constant 0 : i32
    return %c0_i32, %c0_i32_0 : i32, i32
  }
  func.func @transform_14(%arg0: i32) -> (i32, i32) {
    %c0_i32 = arith.constant 0 : i32
    %c0_i32_0 = arith.constant 0 : i32
    %c0_i32_1 = arith.constant 0 : i32
    return %c0_i32, %c0_i32_0 : i32, i32
  }
  func.func @transform_15(%arg0: i32) -> (i32, i32) {
    %c0_i32 = arith.constant 0 : i32
    %c0_i32_0 = arith.constant 0 : i32
    return %arg0, %c0_i32 : i32, i32
  }
}

module attributes {stable_mosaic.version = 11 : i64} {
  func.func @multitask_head_kernel(%arg0: i32, %arg1: memref<8x32xbf16, #tpu.memory_space<vmem>>, %arg2: memref<32x32xbf16, #tpu.memory_space<vmem>>, %arg3: memref<1x32xf32, #tpu.memory_space<vmem>>, %arg4: memref<32x16xbf16, #tpu.memory_space<vmem>>, %arg5: memref<1x16xf32, #tpu.memory_space<vmem>>, %arg6: memref<16x16xbf16, #tpu.memory_space<vmem>>, %arg7: memref<1x16xf32, #tpu.memory_space<vmem>>, %arg8: memref<16x128xbf16, #tpu.memory_space<vmem>>, %arg9: memref<1x128xf32, #tpu.memory_space<vmem>>, %arg10: memref<128x128xbf16, #tpu.memory_space<vmem>>, %arg11: memref<32x256xbf16, #tpu.memory_space<vmem>>, %arg12: memref<128x256xbf16, #tpu.memory_space<vmem>>, %arg13: memref<1x256xf32, #tpu.memory_space<vmem>>, %arg14: memref<256x128xbf16, #tpu.memory_space<vmem>>, %arg15: memref<1x128xf32, #tpu.memory_space<vmem>>, %arg16: memref<8x128xf32, #tpu.memory_space<vmem>>) attributes {dimension_semantics = [#tpu.dimension_semantics<parallel>], iteration_bounds = array<i64: 1>, scalar_prefetch = 0 : i64, scratch_operands = 0 : i64, tpu.core_type = #tpu.core_type<tc>, window_params = [{transform_indices = @transform_0, window_bounds = array<i64: 8, 32>}, {pipeline_mode = #tpu.pipeline_mode<synchronous>, transform_indices = @transform_1, window_bounds = array<i64: 32, 32>}, {pipeline_mode = #tpu.pipeline_mode<synchronous>, transform_indices = @transform_2, window_bounds = array<i64: 1, 32>}, {pipeline_mode = #tpu.pipeline_mode<synchronous>, transform_indices = @transform_3, window_bounds = array<i64: 32, 16>}, {pipeline_mode = #tpu.pipeline_mode<synchronous>, transform_indices = @transform_4, window_bounds = array<i64: 1, 16>}, {pipeline_mode = #tpu.pipeline_mode<synchronous>, transform_indices = @transform_5, window_bounds = array<i64: 16, 16>}, {pipeline_mode = #tpu.pipeline_mode<synchronous>, transform_indices = @transform_6, window_bounds = array<i64: 1, 16>}, {pipeline_mode = #tpu.pipeline_mode<synchronous>, transform_indices = @transform_7, window_bounds = array<i64: 16, 128>}, {pipeline_mode = #tpu.pipeline_mode<synchronous>, transform_indices = @transform_8, window_bounds = array<i64: 1, 128>}, {pipeline_mode = #tpu.pipeline_mode<synchronous>, transform_indices = @transform_9, window_bounds = array<i64: 128, 128>}, {pipeline_mode = #tpu.pipeline_mode<synchronous>, transform_indices = @transform_10, window_bounds = array<i64: 32, 256>}, {pipeline_mode = #tpu.pipeline_mode<synchronous>, transform_indices = @transform_11, window_bounds = array<i64: 128, 256>}, {pipeline_mode = #tpu.pipeline_mode<synchronous>, transform_indices = @transform_12, window_bounds = array<i64: 1, 256>}, {pipeline_mode = #tpu.pipeline_mode<synchronous>, transform_indices = @transform_13, window_bounds = array<i64: 256, 128>}, {pipeline_mode = #tpu.pipeline_mode<synchronous>, transform_indices = @transform_14, window_bounds = array<i64: 1, 128>}, {transform_indices = @transform_15, window_bounds = array<i64: 8, 128>}]} {
    %c0 = arith.constant 0 : index
    %c0_0 = arith.constant 0 : index
    %0 = vector.load %arg1[%c0, %c0_0] : memref<8x32xbf16, #tpu.memory_space<vmem>>, vector<8x32xbf16>
    %c0_1 = arith.constant 0 : index
    %c0_2 = arith.constant 0 : index
    %1 = vector.load %arg2[%c0_1, %c0_2] : memref<32x32xbf16, #tpu.memory_space<vmem>>, vector<32x32xbf16>
    %cst = arith.constant dense<0.000000e+00> : vector<8x32xf32>
    %2 = tpu.matmul %0, %1, %cst {dimension_numbers = #tpu.dot_dimension_numbers<[1], [0], [0], [1], [0, 0, 1, 1], [], []>} : vector<8x32xbf16>, vector<32x32xbf16>, vector<8x32xf32> -> vector<8x32xf32>
    %c0_3 = arith.constant 0 : index
    %c0_4 = arith.constant 0 : index
    %3 = vector.load %arg3[%c0_3, %c0_4] : memref<1x32xf32, #tpu.memory_space<vmem>>, vector<1x32xf32>
    %4 = vector.broadcast %3 : vector<1x32xf32> to vector<8x32xf32>
    %5 = arith.addf %2, %4 : vector<8x32xf32>
    %6 = math.tanh %5 : vector<8x32xf32>
    %7 = arith.truncf %6 : vector<8x32xf32> to vector<8x32xbf16>
    %c0_5 = arith.constant 0 : index
    %c0_6 = arith.constant 0 : index
    %8 = vector.load %arg4[%c0_5, %c0_6] : memref<32x16xbf16, #tpu.memory_space<vmem>>, vector<32x16xbf16>
    %cst_7 = arith.constant dense<0.000000e+00> : vector<8x16xf32>
    %9 = tpu.matmul %7, %8, %cst_7 {dimension_numbers = #tpu.dot_dimension_numbers<[1], [0], [0], [1], [0, 0, 1, 1], [], []>} : vector<8x32xbf16>, vector<32x16xbf16>, vector<8x16xf32> -> vector<8x16xf32>
    %c0_8 = arith.constant 0 : index
    %c0_9 = arith.constant 0 : index
    %10 = vector.load %arg5[%c0_8, %c0_9] : memref<1x16xf32, #tpu.memory_space<vmem>>, vector<1x16xf32>
    %11 = vector.broadcast %10 : vector<1x16xf32> to vector<8x16xf32>
    %12 = arith.addf %9, %11 : vector<8x16xf32>
    %cst_10 = arith.constant 0.000000e+00 : f32
    %13 = vector.broadcast %cst_10 : f32 to vector<8x16xf32>
    %14 = arith.maximumf %12, %13 : vector<8x16xf32>
    %15 = arith.truncf %14 : vector<8x16xf32> to vector<8x16xbf16>
    %c0_11 = arith.constant 0 : index
    %c0_12 = arith.constant 0 : index
    %16 = vector.load %arg6[%c0_11, %c0_12] : memref<16x16xbf16, #tpu.memory_space<vmem>>, vector<16x16xbf16>
    %cst_13 = arith.constant dense<0.000000e+00> : vector<8x16xf32>
    %17 = tpu.matmul %15, %16, %cst_13 {dimension_numbers = #tpu.dot_dimension_numbers<[1], [0], [0], [1], [0, 0, 1, 1], [], []>} : vector<8x16xbf16>, vector<16x16xbf16>, vector<8x16xf32> -> vector<8x16xf32>
    %c0_14 = arith.constant 0 : index
    %c0_15 = arith.constant 0 : index
    %18 = vector.load %arg7[%c0_14, %c0_15] : memref<1x16xf32, #tpu.memory_space<vmem>>, vector<1x16xf32>
    %19 = vector.broadcast %18 : vector<1x16xf32> to vector<8x16xf32>
    %20 = arith.addf %17, %19 : vector<8x16xf32>
    %21 = arith.truncf %20 : vector<8x16xf32> to vector<8x16xbf16>
    %c0_16 = arith.constant 0 : index
    %c0_17 = arith.constant 0 : index
    %22 = vector.load %arg8[%c0_16, %c0_17] : memref<16x128xbf16, #tpu.memory_space<vmem>>, vector<16x128xbf16>
    %cst_18 = arith.constant dense<0.000000e+00> : vector<8x128xf32>
    %23 = tpu.matmul %21, %22, %cst_18 {dimension_numbers = #tpu.dot_dimension_numbers<[1], [0], [0], [1], [0, 0, 1, 1], [], []>} : vector<8x16xbf16>, vector<16x128xbf16>, vector<8x128xf32> -> vector<8x128xf32>
    %c0_19 = arith.constant 0 : index
    %c0_20 = arith.constant 0 : index
    %24 = vector.load %arg9[%c0_19, %c0_20] : memref<1x128xf32, #tpu.memory_space<vmem>>, vector<1x128xf32>
    %25 = vector.broadcast %24 : vector<1x128xf32> to vector<8x128xf32>
    %26 = arith.addf %23, %25 : vector<8x128xf32>
    %cst_21 = arith.constant dense<0xFF800000> : vector<8xf32>
    %27 = vector.multi_reduction <maximumf>, %26, %cst_21 [1] : vector<8x128xf32> to vector<8xf32>
    %28 = vector.shape_cast %27 : vector<8xf32> to vector<8x1xf32>
    %29 = vector.broadcast %28 : vector<8x1xf32> to vector<8x128xf32>
    %30 = arith.subf %26, %29 : vector<8x128xf32>
    %31 = math.exp %30 : vector<8x128xf32>
    %32 = arith.truncf %31 : vector<8x128xf32> to vector<8x128xbf16>
    %c0_22 = arith.constant 0 : index
    %c0_23 = arith.constant 0 : index
    %33 = vector.load %arg10[%c0_22, %c0_23] : memref<128x128xbf16, #tpu.memory_space<vmem>>, vector<128x128xbf16>
    %cst_24 = arith.constant dense<0.000000e+00> : vector<8x128xf32>
    %34 = tpu.matmul %32, %33, %cst_24 {dimension_numbers = #tpu.dot_dimension_numbers<[1], [0], [0], [1], [0, 0, 1, 1], [], []>} : vector<8x128xbf16>, vector<128x128xbf16>, vector<8x128xf32> -> vector<8x128xf32>
    %cst_25 = arith.constant 1.000000e-30 : f32
    %35 = vector.broadcast %cst_25 : f32 to vector<8x128xf32>
    %36 = arith.maximumf %34, %35 : vector<8x128xf32>
    %37 = tpu.reciprocal %36 {approx = true} : vector<8x128xf32> -> vector<8x128xf32>
    %38 = arith.mulf %31, %37 : vector<8x128xf32>
    %39 = arith.truncf %38 : vector<8x128xf32> to vector<8x128xbf16>
    %c0_26 = arith.constant 0 : index
    %c0_27 = arith.constant 0 : index
    %40 = vector.load %arg11[%c0_26, %c0_27] : memref<32x256xbf16, #tpu.memory_space<vmem>>, vector<32x256xbf16>
    %cst_28 = arith.constant dense<0.000000e+00> : vector<8x256xf32>
    %41 = tpu.matmul %7, %40, %cst_28 {dimension_numbers = #tpu.dot_dimension_numbers<[1], [0], [0], [1], [0, 0, 1, 1], [], []>} : vector<8x32xbf16>, vector<32x256xbf16>, vector<8x256xf32> -> vector<8x256xf32>
    %c0_29 = arith.constant 0 : index
    %c0_30 = arith.constant 0 : index
    %42 = vector.load %arg12[%c0_29, %c0_30] : memref<128x256xbf16, #tpu.memory_space<vmem>>, vector<128x256xbf16>
    %cst_31 = arith.constant dense<0.000000e+00> : vector<8x256xf32>
    %43 = tpu.matmul %39, %42, %cst_31 {dimension_numbers = #tpu.dot_dimension_numbers<[1], [0], [0], [1], [0, 0, 1, 1], [], []>} : vector<8x128xbf16>, vector<128x256xbf16>, vector<8x256xf32> -> vector<8x256xf32>
    %44 = arith.addf %41, %43 : vector<8x256xf32>
    %c0_32 = arith.constant 0 : index
    %c0_33 = arith.constant 0 : index
    %45 = vector.load %arg13[%c0_32, %c0_33] : memref<1x256xf32, #tpu.memory_space<vmem>>, vector<1x256xf32>
    %46 = vector.broadcast %45 : vector<1x256xf32> to vector<8x256xf32>
    %47 = arith.addf %44, %46 : vector<8x256xf32>
    %cst_34 = arith.constant 0.000000e+00 : f32
    %48 = vector.broadcast %cst_34 : f32 to vector<8x256xf32>
    %49 = arith.maximumf %47, %48 : vector<8x256xf32>
    %50 = arith.truncf %49 : vector<8x256xf32> to vector<8x256xbf16>
    %c0_35 = arith.constant 0 : index
    %c0_36 = arith.constant 0 : index
    %51 = vector.load %arg14[%c0_35, %c0_36] : memref<256x128xbf16, #tpu.memory_space<vmem>>, vector<256x128xbf16>
    %cst_37 = arith.constant dense<0.000000e+00> : vector<8x128xf32>
    %52 = tpu.matmul %50, %51, %cst_37 {dimension_numbers = #tpu.dot_dimension_numbers<[1], [0], [0], [1], [0, 0, 1, 1], [], []>} : vector<8x256xbf16>, vector<256x128xbf16>, vector<8x128xf32> -> vector<8x128xf32>
    %c0_38 = arith.constant 0 : index
    %c0_39 = arith.constant 0 : index
    %53 = vector.load %arg15[%c0_38, %c0_39] : memref<1x128xf32, #tpu.memory_space<vmem>>, vector<1x128xf32>
    %54 = vector.broadcast %53 : vector<1x128xf32> to vector<8x128xf32>
    %55 = arith.addf %52, %54 : vector<8x128xf32>
    %56 = arith.addf %26, %55 : vector<8x128xf32>
    %c0_40 = arith.constant 0 : index
    %c0_41 = arith.constant 0 : index
    %57 = vector.load %arg16[%c0_40, %c0_41] : memref<8x128xf32, #tpu.memory_space<vmem>>, vector<8x128xf32>
    tpu.vector_store %arg16[%c0_40, %c0_41], %56 {strides = array<i32>} : memref<8x128xf32, #tpu.memory_space<vmem>>, vector<8x128xf32>,
    return
  }
  func.func @transform_0(%arg0: i32) -> (i32, i32) {
    %c0_i32 = arith.constant 0 : i32
    %c0_i32_0 = arith.constant 0 : i32
    return %arg0, %c0_i32 : i32, i32
  }
  func.func @transform_1(%arg0: i32) -> (i32, i32) {
    %c0_i32 = arith.constant 0 : i32
    %c0_i32_0 = arith.constant 0 : i32
    %c0_i32_1 = arith.constant 0 : i32
    return %c0_i32, %c0_i32_0 : i32, i32
  }
  func.func @transform_2(%arg0: i32) -> (i32, i32) {
    %c0_i32 = arith.constant 0 : i32
    %c0_i32_0 = arith.constant 0 : i32
    %c0_i32_1 = arith.constant 0 : i32
    return %c0_i32, %c0_i32_0 : i32, i32
  }
  func.func @transform_3(%arg0: i32) -> (i32, i32) {
    %c0_i32 = arith.constant 0 : i32
    %c0_i32_0 = arith.constant 0 : i32
    %c0_i32_1 = arith.constant 0 : i32
    return %c0_i32, %c0_i32_0 : i32, i32
  }
  func.func @transform_4(%arg0: i32) -> (i32, i32) {
    %c0_i32 = arith.constant 0 : i32
    %c0_i32_0 = arith.constant 0 : i32
    %c0_i32_1 = arith.constant 0 : i32
    return %c0_i32, %c0_i32_0 : i32, i32
  }
  func.func @transform_5(%arg0: i32) -> (i32, i32) {
    %c0_i32 = arith.constant 0 : i32
    %c0_i32_0 = arith.constant 0 : i32
    %c0_i32_1 = arith.constant 0 : i32
    return %c0_i32, %c0_i32_0 : i32, i32
  }
  func.func @transform_6(%arg0: i32) -> (i32, i32) {
    %c0_i32 = arith.constant 0 : i32
    %c0_i32_0 = arith.constant 0 : i32
    %c0_i32_1 = arith.constant 0 : i32
    return %c0_i32, %c0_i32_0 : i32, i32
  }
  func.func @transform_7(%arg0: i32) -> (i32, i32) {
    %c0_i32 = arith.constant 0 : i32
    %c0_i32_0 = arith.constant 0 : i32
    %c0_i32_1 = arith.constant 0 : i32
    return %c0_i32, %c0_i32_0 : i32, i32
  }
  func.func @transform_8(%arg0: i32) -> (i32, i32) {
    %c0_i32 = arith.constant 0 : i32
    %c0_i32_0 = arith.constant 0 : i32
    %c0_i32_1 = arith.constant 0 : i32
    return %c0_i32, %c0_i32_0 : i32, i32
  }
  func.func @transform_9(%arg0: i32) -> (i32, i32) {
    %c0_i32 = arith.constant 0 : i32
    %c0_i32_0 = arith.constant 0 : i32
    %c0_i32_1 = arith.constant 0 : i32
    return %c0_i32, %c0_i32_0 : i32, i32
  }
  func.func @transform_10(%arg0: i32) -> (i32, i32) {
    %c0_i32 = arith.constant 0 : i32
    %c0_i32_0 = arith.constant 0 : i32
    %c0_i32_1 = arith.constant 0 : i32
    return %c0_i32, %c0_i32_0 : i32, i32
  }
  func.func @transform_11(%arg0: i32) -> (i32, i32) {
    %c0_i32 = arith.constant 0 : i32
    %c0_i32_0 = arith.constant 0 : i32
    %c0_i32_1 = arith.constant 0 : i32
    return %c0_i32, %c0_i32_0 : i32, i32
  }
  func.func @transform_12(%arg0: i32) -> (i32, i32) {
    %c0_i32 = arith.constant 0 : i32
    %c0_i32_0 = arith.constant 0 : i32
    %c0_i32_1 = arith.constant 0 : i32
    return %c0_i32, %c0_i32_0 : i32, i32
  }
  func.func @transform_13(%arg0: i32) -> (i32, i32) {
    %c0_i32 = arith.constant 0 : i32
    %c0_i32_0 = arith.constant 0 : i32
    %c0_i32_1 = arith.constant 0 : i32
    return %c0_i32, %c0_i32_0 : i32, i32
  }
  func.func @transform_14(%arg0: i32) -> (i32, i32) {
    %c0_i32 = arith.constant 0 : i32
    %c0_i32_0 = arith.constant 0 : i32
    %c0_i32_1 = arith.constant 0 : i32
    return %c0_i32, %c0_i32_0 : i32, i32
  }
  func.func @transform_15(%arg0: i32) -> (i32, i32) {
    %c0_i32 = arith.constant 0 : i32
    %c0_i32_0 = arith.constant 0 : i32
    return %arg0, %c0_i32 : i32, i32
  }
}

</mosaic_0001>

<bundles_post_ra>
// kernel: tpu_custom_call.1
= control target key start
LH: loop header
LB: loop body
LE: loop exit
PB: predicated region body
PF: predicated region fallthrough
CT: control target
= control target key end

     0   :  { %s1573_s0 = inlined_call_operand.hbm [shape: bf16[8,32], index: 0, kind: input, shape index: {}]   ;;  %s1574_s1 = inlined_call_operand.vmem [shape: bf16[32,32], index: 1, kind: input, shape index: {}]   ;;  %s1575_s2 = inlined_call_operand.vmem [shape: f32[1,32], index: 2, kind: input, shape index: {}]   ;;  %s1576_s3 = inlined_call_operand.vmem [shape: bf16[32,16], index: 3, kind: input, shape index: {}]   ;;  %s1577_s4 = inlined_call_operand.vmem [shape: f32[1,16], index: 4, kind: input, shape index: {}]   ;;  %s1578_s5 = inlined_call_operand.vmem [shape: bf16[16,16], index: 5, kind: input, shape index: {}]   ;;  %s1579_s6 = inlined_call_operand.vmem [shape: f32[1,16], index: 6, kind: input, shape index: {}]   ;;  %s1580_s7 = inlined_call_operand.hbm [shape: bf16[16,128], index: 7, kind: input, shape index: {}]   ;;  %s1581_s8 = inlined_call_operand.hbm [shape: f32[1,128], index: 8, kind: input, shape index: {}]   ;;  %s1582_s9 = inlined_call_operand.hbm [shape: bf16[128,128], index: 9, kind: input, shape index: {}]   ;;  %s1583_s10 = inlined_call_operand.vmem [shape: bf16[32,256], index: 10, kind: input, shape index: {}]   ;;  %s1584_s11 = inlined_call_operand.hbm [shape: bf16[128,256], index: 11, kind: input, shape index: {}]   ;;  %s1585_s12 = inlined_call_operand.vmem [shape: f32[1,256], index: 12, kind: input, shape index: {}]   ;;  %s1586_s13 = inlined_call_operand.hbm [shape: bf16[256,128], index: 13, kind: input, shape index: {}]   ;;  %s1587_s14 = inlined_call_operand.vmem [shape: f32[1,128], index: 14, kind: input, shape index: {}]   ;;  %s1588_s15 = inlined_call_operand.hbm [shape: f32[8,128], index: 15, kind: output, shape index: {}]  }
   0x1   :  { %1590 = sst [smem:[#allocation19_spill]] %s1588_s15 }
   0x2   :  { %20 = vsyncpa [#allocation3], 0 }
   0x3   :  { %21 = vsyncpa [#allocation6], 0 }
   0x4   :  { %22 = vsyncpa [#allocation9], 0 }
   0x5   :  { %23 = vsyncpa [#allocation12], 0 }
   0x6   :  { %24 = vsyncpa [#allocation4], 0  ;;  %s1308_s18 = smov [#allocation5]   ;;  %s1144_s22 = scalar_lea.hbm %s1580_s7, 128 }
   0x7   :  { %s52_s19 = sshll.u32 %s1308_s18, 4  ;;  %p1145_p0 = scmp.ne.s32.totalorder %s1580_s7, %s1144_s22  ;;  %s53_s19 = int_to_ptr.vmem [resolvable:$true] %s52_s19 }
   0x8   :  { %p1148_p1 = scmp.lt.u32.totalorder %s1144_s22, %s1580_s7 }
   0xa   :  { %p1150_p2 = pnand %p1148_p1, %p1145_p0 }
   0xc   :  { %1153 = shalt.err (!%p1150_p2)
}
   0xd   :  { %s1154_s27 = scalar_lea.vmem %s53_s19, 128  ;;  %p1159_p4 = scmp.lt.s32.totalorder %s53_s19, %s53_s19 }
   0xe   :  { %p1155_p3 = scmp.ne.s32.totalorder %s53_s19, %s1154_s27  ;;  %p1160_p5 = scmp.lt.s32.totalorder %s1154_s27, %s1154_s27 }
  0x10   :  { %p1161_p6 = por %p1160_p5, %p1159_p4 }
  0x12   :  { %p1162_p7 = pnand %p1161_p6, %p1155_p3 }
  0x14   :  { %1165 = shalt.err (!%p1162_p7)
}
  0x15   :  { %s1309_s28 = smov 64   ;;  %s1310_s29 = smov 4  }
  0x16   :  { %58 = dma.hbm_to_vmem [thread:$0]  %s1580_s7, 128, %s53_s19, [#allocation6], %s1309_s28, %s1309_s28, %s1310_s29  }
  0x17   :  { %s1311_s17 = smov [#allocation8]   ;;  %s1312_s20 = smov [#allocation2]  }
  0x18   :  { %s74_s18 = sshll.u32 %s1311_s17, 4  ;;  %s31_s21 = sshll.u32 %s1312_s20, 4  ;;  %s75_s18 = int_to_ptr.vmem [resolvable:$true] %s74_s18  ;;  %s32_s21 = int_to_ptr.vmem [resolvable:$true] %s31_s21 }
  0x19   :  { %s1166_s24 = scalar_lea.hbm %s1582_s9, 1024 }
  0x1a   :  { %p1167_p8 = scmp.ne.s32.totalorder %s1582_s9, %s1166_s24  ;;  %p1170_p9 = scmp.lt.u32.totalorder %s1166_s24, %s1582_s9 }
  0x1c   :  { %p1172_p10 = pnand %p1170_p9, %p1167_p8 }
  0x1e   :  { %1175 = shalt.err (!%p1172_p10)
}
  0x1f   :  { %s1176_s7 = scalar_lea.vmem %s75_s18, 1024  ;;  %p1181_p12 = scmp.lt.s32.totalorder %s75_s18, %s75_s18 }
  0x20   :  { %p1177_p11 = scmp.ne.s32.totalorder %s75_s18, %s1176_s7  ;;  %p1182_p13 = scmp.lt.s32.totalorder %s1176_s7, %s1176_s7 }
  0x22   :  { %p1183_p0 = por %p1182_p13, %p1181_p12 }
  0x24   :  { %p1184_p1 = pnand %p1183_p0, %p1177_p11 }
  0x26   :  { %1187 = shalt.err (!%p1184_p1)
}
  0x27   :  { %80 = dma.hbm_to_vmem [thread:$0]  %s1582_s9, 1024, %s75_s18, [#allocation9], %s1309_s28, %s1309_s28, %s1310_s29  }
  0x28   :  { %s1188_s17 = scalar_lea.hbm %s1573_s0, 64 }
  0x29   :  { %p1189_p2 = scmp.ne.s32.totalorder %s1573_s0, %s1188_s17  ;;  %p1192_p3 = scmp.lt.u32.totalorder %s1188_s17, %s1573_s0 }
  0x2b   :  { %p1194_p4 = pnand %p1192_p3, %p1189_p2 }
  0x2d   :  { %1197 = shalt.err (!%p1194_p4)
}
  0x2e   :  { %s1198_s25 = scalar_lea.vmem %s32_s21, 64  ;;  %p1203_p6 = scmp.lt.s32.totalorder %s32_s21, %s32_s21 }
  0x2f   :  { %p1199_p5 = scmp.ne.s32.totalorder %s32_s21, %s1198_s25  ;;  %p1204_p7 = scmp.lt.s32.totalorder %s1198_s25, %s1198_s25 }
  0x31   :  { %p1205_p8 = por %p1204_p7, %p1203_p6 }
  0x33   :  { %p1206_p9 = pnand %p1205_p8, %p1199_p5 }
  0x35   :  { %1209 = shalt.err (!%p1206_p9)
}
  0x36   :  { %34 = dma.hbm_to_vmem [thread:$0]  %s1573_s0, 64, %s32_s21, [#allocation3]  }
  0x37   :  { %s1313_s26 = smov [#allocation7]   ;;  %s1314_s7 = smov [#allocation10]  }
  0x38   :  { %s65_s27 = sshll.u32 %s1313_s26, 4  ;;  %s88_s19 = sshll.u32 %s1314_s7, 4  ;;  %s66_s27 = int_to_ptr.vmem [resolvable:$true] %s65_s27  ;;  %s89_s19 = int_to_ptr.vmem [resolvable:$true] %s88_s19 }
  0x39   :  { %s1210_s15 = scalar_lea.hbm %s1581_s8, 16 }
  0x3a   :  { %p1211_p10 = scmp.ne.s32.totalorder %s1581_s8, %s1210_s15  ;;  %p1214_p11 = scmp.lt.u32.totalorder %s1210_s15, %s1581_s8 }
  0x3c   :  { %p1216_p12 = pnand %p1214_p11, %p1211_p10 }
  0x3e   :  { %1219 = shalt.err (!%p1216_p12)
}
  0x3f   :  { %s1220_s0 = scalar_lea.vmem %s66_s27, 16  ;;  %s1224_s21 = scalar_lea.vmem %s66_s27, 32 }
  0x40   :  { %p1221_p13 = scmp.ne.s32.totalorder %s66_s27, %s1220_s0  ;;  %p1225_p0 = scmp.lt.s32.totalorder %s66_s27, %s66_s27 }
  0x41   :  { %p1226_p1 = scmp.lt.s32.totalorder %s1224_s21, %s1220_s0 }
  0x43   :  { %p1227_p2 = por %p1226_p1, %p1225_p0 }
  0x45   :  { %p1228_p3 = pnand %p1227_p2, %p1221_p13 }
  0x47   :  { %1231 = shalt.err (!%p1228_p3)
}
  0x48   :  { %68 = dma.hbm_to_vmem [thread:$0]  %s1581_s8, 16, %s66_s27, [#allocation6]  }
  0x49   :  { %s1232_s26 = scalar_lea.hbm %s1584_s11, 2048 }
  0x4a   :  { %p1233_p4 = scmp.ne.s32.totalorder %s1584_s11, %s1232_s26  ;;  %p1236_p5 = scmp.lt.u32.totalorder %s1232_s26, %s1584_s11 }
  0x4c   :  { %p1238_p6 = pnand %p1236_p5, %p1233_p4 }
  0x4e   :  { %1241 = shalt.err (!%p1238_p6)
}
  0x4f   :  { %s1242_s17 = scalar_lea.vmem %s89_s19, 2048  ;;  %p1247_p8 = scmp.lt.s32.totalorder %s89_s19, %s89_s19 }
  0x50   :  { %p1243_p7 = scmp.ne.s32.totalorder %s89_s19, %s1242_s17  ;;  %p1248_p9 = scmp.lt.s32.totalorder %s1242_s17, %s1242_s17 }
  0x52   :  { %p1249_p10 = por %p1248_p9, %p1247_p8 }
  0x54   :  { %p1250_p11 = pnand %p1249_p10, %p1243_p7 }
  0x56   :  { %1253 = shalt.err (!%p1250_p11)
}
  0x57   :  { %s1315_s8 = smov 128   ;;  %s1316_s27 = smov 8  }
  0x58   :  { %94 = dma.hbm_to_vmem [thread:$0]  %s1584_s11, 2048, %s89_s19, [#allocation9], %s1315_s8, %s1315_s8, %s1316_s27  }
  0x59   :  { %s1317_s23 = smov [#allocation11]   ;;  %s1254_s25 = scalar_lea.hbm %s1586_s13, 2048 }
  0x5a   :  { %s102_s0 = sshll.u32 %s1317_s23, 4  ;;  %p1255_p12 = scmp.ne.s32.totalorder %s1586_s13, %s1254_s25  ;;  %s103_s0 = int_to_ptr.vmem [resolvable:$true] %s102_s0 }
  0x5b   :  { %p1258_p13 = scmp.lt.u32.totalorder %s1254_s25, %s1586_s13 }
  0x5d   :  { %p1260_p0 = pnand %p1258_p13, %p1255_p12 }
  0x5f   :  { %1263 = shalt.err (!%p1260_p0)
}
  0x60   :  { %s1264_s30 = scalar_lea.vmem %s103_s0, 2048  ;;  %p1269_p2 = scmp.lt.s32.totalorder %s103_s0, %s103_s0 }
  0x61   :  { %p1265_p1 = scmp.ne.s32.totalorder %s103_s0, %s1264_s30  ;;  %p1270_p3 = scmp.lt.s32.totalorder %s1264_s30, %s1264_s30 }
  0x63   :  { %p1271_p4 = por %p1270_p3, %p1269_p2 }
  0x65   :  { %p1272_p5 = pnand %p1271_p4, %p1265_p1 }
  0x67   :  { %1275 = shalt.err (!%p1272_p5)
}
  0x68   :  { %108 = dma.hbm_to_vmem [thread:$0]  %s1586_s13, 2048, %s103_s0, [#allocation12], %s1309_s28, %s1309_s28, %s1310_s29  }
  0x69   :  { %1298 = dma.done.wait [#allocation3], 64  }
  0x6a   :  { %1299 = vsyncadd [#allocation3], 4294967232 }
  0x6b   :  { %1300 = dma.done.wait [#allocation6], 144  }
  0x6c   :  { %1301 = vsyncadd [#allocation6], 4294967152 }
  0x6d   :  { %1302 = dma.done.wait [#allocation9], 3072  }
  0x6e   :  { %1303 = vsyncadd [#allocation9], 4294964224 }
  0x6f   :  { %1304 = dma.done.wait [#allocation12], 2048  }
  0x70   :  { %1305 = vsyncadd [#allocation12], 4294965248  ;;  %v1318_v0 = vmov 0.0   ;;  %vm1319_vm0 = vmmov 0   ;;  %v1078_v1 = vld [vmem:[%s1574_s1] sm:$0xff]   ;;  %v1079_v2 = vld [vmem:[%s1574_s1 + $0x8] sm:$0xff]  }
  0x71   :  { %1016 = vmatprep.subr.bf16.mxu0 %v1318_v0  ;;  %1020 = vmatprep.mubr.msk.bf16.mxu0 %vm1319_vm0, %v1318_v0  ;;  %vm154_vm1 = vcmask 261120   ;;  %v130_v3 = vld [vmem:[#allocation2] sm:$0xf]  ;;  %v1081_v5 = vld [vmem:[%s1576_s3 + $0x8] sm:$0xff]   ;;  %vm283_vm2 = vcmask 130048   ;;  %v1085_v32 = vld [vmem:[#allocation8 + $0x8] sm:$0xff]  }
  0x72   :  { %1038 = vmatprep.subr.bf16.mxu1 %v1318_v0  ;;  %1040 = vmatprep.mubr.msk.bf16.mxu1 %vm1319_vm0, %v1318_v0  ;;  %v1080_v4 = vld [vmem:[%s1576_s3] sm:$0xff]   ;;  %v1084_v31 = vld [vmem:[#allocation8] sm:$0xff]   ;;  %v926_v35 = vld [vmem:[#allocation7] ss:$0 sm:$0xff]  ;;  %v1320_v46 = vmov 0   ;;  %s1321_s11 = smov [#allocation13]  }
  0x73   :  { %1017 = vmatpush3.bf16.msra.mxu0 %v1078_v1  ;;  %v915_v6 = vld [vmem:[%s1575_s2] ss:$0 sm:$0xff]  ;;  %v1083_v23 = vld [vmem:[#allocation5] sm:$0xff]   ;;  %v1088_v41 = vld [vmem:[#allocation8 + $0x20] sm:$0xff]   ;;  %s903_s19 = sshll.u32 %s1321_s11, 4  ;;  %s904_s19 = int_to_ptr.vmem [resolvable:$true] %s903_s19 }
  0x74   :  { %1018 = vmatprep.subr.bf16.mxu0 %v1318_v0  ;;  %v1082_v13 = vld [vmem:[%s1578_s5] sm:$0xff]   ;;  %1039 = vmatpush3.bf16.msra.mxu1 %v1083_v23  ;;  %v1089_v42 = vld [vmem:[#allocation8 + $0x28] sm:$0xff]   ;;  %s1276_s13 = scalar_lea.vmem %s904_s19, 128  ;;  %p1281_p7 = scmp.lt.s32.totalorder %s904_s19, %s904_s19 }
  0x75   :  { %v919_v15 = vld [vmem:[%s1577_s4] ss:$0 sm:$0xff]  ;;  %v1087_v34 = vld [vmem:[#allocation8 + $0x18] sm:$0xff]   ;;  %v1098_v47 = vld [vmem:[#allocation10] ss:$8 sps:$4 sm:$0xff]   ;;  %p1277_p6 = scmp.ne.s32.totalorder %s904_s19, %s1276_s13  ;;  %p1282_p8 = scmp.lt.s32.totalorder %s1276_s13, %s1276_s13 }
  0x76   :  { %v923_v24 = vld [vmem:[%s1579_s6] ss:$0 sm:$0xff]  ;;  %v1091_v44 = vld [vmem:[#allocation8 + $0x38] sm:$0xff]   ;;  %v1100_v48 = vld [vmem:[#allocation10 + $0x4] ss:$8 sps:$4 sm:$0xff]  }
  0x77   :  { %1019 = vmatpush3.bf16.msra.mxu0 %v1079_v2  ;;  %v1086_v33 = vld [vmem:[#allocation8 + $0x10] sm:$0xff]   ;;  %600 = vmatprep.subr.bf16.mxu1 %v1100_v48  ;;  %v1106_v51 = vld [vmem:[#allocation10 + $0x24] ss:$8 sps:$4 sm:$0xff]   ;;  %v1104_v52 = vld [vmem:[#allocation10 + $0x20] ss:$8 sps:$4 sm:$0xff]   ;;  %p1283_p9 = por %p1282_p8, %p1281_p7 }
  0x78   :  { %1024 = vmatprep.subr.bf16.mxu0 %v1318_v0  ;;  %v1090_v43 = vld [vmem:[#allocation8 + $0x30] sm:$0xff]   ;;  %v1095_v62 = vld [vmem:[%s1583_s10 + $0x10] ss:$8 sps:$4 sm:$0xff]  }
  0x79   :  { %v1094_v45 = vld [vmem:[%s1583_s10 + $0x4] ss:$8 sps:$4 sm:$0xff]   ;;  %v1092_v59 = vld [vmem:[%s1583_s10] ss:$8 sps:$4 sm:$0xff]   ;;  %v1097_v61 = vld [vmem:[%s1583_s10 + $0x14] ss:$8 sps:$4 sm:$0xff]   ;;  %p1284_p10 = pnand %p1283_p9, %p1277_p6 }
  0x7a   :  { %1021 = vmatmul.mubr.msk.bf16.vlgmr.msra.gmra.mrb[0].mxu0 %vm154_vm1, %v130_v3  ;;  %v1103_v49 = vld [vmem:[#allocation10 + $0x14] ss:$8 sps:$4 sm:$0xff]   ;;  %v1101_v50 = vld [vmem:[#allocation10 + $0x10] ss:$8 sps:$4 sm:$0xff]   ;;  %v1112_v63 = vld [vmem:[#allocation10 + $0x44] ss:$8 sps:$4 sm:$0xff]  }
  0x7b   :  { %1028 = vmatprep.mubr.msk.bf16.mxu0 %vm1319_vm0, %v1318_v0  ;;  %1025 = vmatpush3.bf16.msra.mxu0 %v1080_v4  ;;  %v1109_v53 = vld [vmem:[#allocation10 + $0x34] ss:$8 sps:$4 sm:$0xff]   ;;  %v1107_v54 = vld [vmem:[#allocation10 + $0x30] ss:$8 sps:$4 sm:$0xff]   ;;  %v1118_v3 = vld [vmem:[#allocation10 + $0x64] ss:$8 sps:$4 sm:$0xff]  }
  0x7c   :  { %1026 = vmatprep.subr.bf16.mxu0 %v1318_v0  ;;  %v1113_v1 = vld [vmem:[#allocation10 + $0x50] ss:$8 sps:$4 sm:$0xff]   ;;  %v1115_v2 = vld [vmem:[#allocation10 + $0x54] ss:$8 sps:$4 sm:$0xff]   ;;  %v1116_v4 = vld [vmem:[#allocation10 + $0x60] ss:$8 sps:$4 sm:$0xff]  }
  0x7d   :  { %v1126_v23 = vld [vmem:[#allocation11 + $0x50] sm:$0xff]  }
  0x7f   :  { %1027 = vmatpush3.bf16.msra.mxu0 %v1081_v5  ;;  %v1119_v5 = vld [vmem:[#allocation10 + $0x70] ss:$8 sps:$4 sm:$0xff]  }
  0x80   :  { %1032 = vmatprep.subr.bf16.mxu0 %v1318_v0 }
 0x14d   :  { %v192_v7 = vpop.f32.mrb[0].mxu0 }
 0x14e   :  { %v193_v8 = vadd.f32 %v915_v6, %v192_v7  ;;  %v1022_v9 = vpop.f32.mrb[1].mxu0  ;;  %v1121_v6 = vld [vmem:[#allocation10 + $0x74] ss:$8 sps:$4 sm:$0xff]   ;;  %v1122_v7 = vld [vmem:[#allocation11 + $0x40] sm:$0xff]  }
 0x14f   :  { %v195_v10 = vpop.f32.mrb[2].mxu0 }
 0x150   :  { %1138 = vtanh.f32 %v193_v8  ;;  %v1023_v11 = vpop.f32.mrb[3].mxu0 }
 0x15a   :  { %v1139_v12 = vpop.eup %1138 }
 0x15b   :  { %v1514_v14 = vpack.c.bf16 %v1139_v12, %v1139_v12 }
 0x15d   :  { %1029 = vmatmul.mubr.msk.bf16.vlgmr.msra.gmra.mrb[4].mxu0 %vm154_vm1, %v1514_v14 }
 0x15e   :  { %1033 = vmatpush3.bf16.msra.mxu0 %v1082_v13  ;;  %1034 = vmatprep.mubr.msk.bf16.mxu0 %vm1319_vm0, %v1318_v0 }
 0x15f   :  { %1044 = vmatprep.subr.bf16.mxu0 %v1318_v0 }
 0x230   :  { %v260_v16 = vpop.f32.mrb[4].mxu0 }
 0x231   :  { %v261_v17 = vadd.f32 %v919_v15, %v260_v16  ;;  %v1030_v18 = vpop.f32.mrb[5].mxu0 }
 0x232   :  { %v263_v19 = vpop.f32.mrb[6].mxu0 }
 0x233   :  { %v266_v20 = vmax.f32 %v261_v17, 0.0  ;;  %v1031_v21 = vpop.f32.mrb[7].mxu0  ;;  %v1123_v19 = vld [vmem:[#allocation11] sm:$0xff]  }
 0x234   :  { %v1124_v21 = vld [vmem:[#allocation11 + $0x48] sm:$0xff]  }
 0x235   :  { %v267_v22 = vpack.c.bf16 %v266_v20, %v266_v20 }
 0x237   :  { %1035 = vmatmul.mubr.msk.bf16.vlgmr.msra.gmra.mrb[8].mxu0 %vm283_vm2, %v267_v22  ;;  %v1125_v22 = vld [vmem:[#allocation11 + $0x8] sm:$0xff]  }
 0x238   :  { %1060 = vmatprep.mubr.msk.bf16.mxu0 %vm1319_vm0, %v1318_v0  ;;  %1045 = vmatpush3.bf16.msra.mxu0 %v1084_v31  ;;  %v1134_v31 = vld [vmem:[#allocation11 + $0x70] sm:$0xff]  }
 0x239   :  { %1046 = vmatprep.subr.bf16.mxu0 %v1318_v0 }
 0x23c   :  { %1047 = vmatpush3.bf16.msra.mxu0 %v1085_v32  ;;  %v1135_v32 = vld [vmem:[#allocation11 + $0x30] sm:$0xff]  }
 0x23d   :  { %1048 = vmatprep.subr.bf16.mxu0 %v1318_v0 }
 0x240   :  { %1049 = vmatpush3.bf16.msra.mxu0 %v1086_v33  ;;  %v1136_v33 = vld [vmem:[#allocation11 + $0x78] sm:$0xff]  }
 0x241   :  { %1050 = vmatprep.subr.bf16.mxu0 %v1318_v0 }
 0x244   :  { %1051 = vmatpush3.bf16.msra.mxu0 %v1087_v34  ;;  %v1137_v34 = vld [vmem:[#allocation11 + $0x38] sm:$0xff]  }
 0x245   :  { %1052 = vmatprep.subr.bf16.mxu0 %v1318_v0 }
 0x248   :  { %1053 = vmatpush3.bf16.msra.mxu0 %v1088_v41 }
 0x249   :  { %1054 = vmatprep.subr.bf16.mxu0 %v1318_v0 }
 0x24c   :  { %1055 = vmatpush3.bf16.msra.mxu0 %v1089_v42 }
 0x24d   :  { %1056 = vmatprep.subr.bf16.mxu0 %v1318_v0 }
 0x250   :  { %1057 = vmatpush3.bf16.msra.mxu0 %v1090_v43 }
 0x251   :  { %1058 = vmatprep.subr.bf16.mxu0 %v1318_v0  ;;  %v1110_v0 = vld [vmem:[#allocation10 + $0x40] ss:$8 sps:$4 sm:$0xff]  }
 0x254   :  { %1059 = vmatpush3.bf16.msra.mxu0 %v1091_v44 }
 0x255   :  { %661 = vmatprep.subr.bf16.mxu0 %v1094_v45 }
 0x30a   :  { %v321_v25 = vpop.f32.mrb[8].mxu0 }
 0x30b   :  { %v322_v26 = vadd.f32 %v923_v24, %v321_v25  ;;  %v1036_v27 = vpop.f32.mrb[9].mxu0  ;;  %v1127_v24 = vld [vmem:[#allocation11 + $0x10] sm:$0xff]   ;;  %v1128_v25 = vld [vmem:[#allocation11 + $0x58] sm:$0xff]  }
 0x30c   :  { %v324_v28 = vpop.f32.mrb[10].mxu0  ;;  %v1130_v27 = vld [vmem:[#allocation11 + $0x60] sm:$0xff]  }
 0x30d   :  { %v327_v29 = vpack.c.bf16 %v322_v26, %v322_v26  ;;  %v1037_v30 = vpop.f32.mrb[11].mxu0  ;;  %v1129_v26 = vld [vmem:[#allocation11 + $0x18] sm:$0xff]   ;;  %v1131_v28 = vld [vmem:[#allocation11 + $0x20] sm:$0xff]  }
 0x30e   :  { %v1133_v30 = vld [vmem:[#allocation11 + $0x28] sm:$0xff]  }
 0x30f   :  { %1041 = vmatmul.mubr.msk.bf16.vlgmr.msra.gmra.mrb[0].mxu1 %vm283_vm2, %v327_v29  ;;  %v1132_v29 = vld [vmem:[#allocation11 + $0x68] sm:$0xff]  }
 0x310   :  { %632 = vmatprep.mubr.bf16.mxu1 %v1320_v46  ;;  %601 = vmatpush1.bf16.msra.mxu1 %v1098_v47 }
 0x311   :  { %602 = vmatprep.subr.bf16.mxu1 %v1103_v49 }
 0x314   :  { %603 = vmatpush1.bf16.msra.mxu1 %v1101_v50 }
 0x315   :  { %604 = vmatprep.subr.bf16.mxu1 %v1106_v51 }
 0x318   :  { %605 = vmatpush1.bf16.msra.mxu1 %v1104_v52 }
 0x319   :  { %606 = vmatprep.subr.bf16.mxu1 %v1109_v53 }
 0x31c   :  { %607 = vmatpush1.bf16.msra.mxu1 %v1107_v54 }
 0x31d   :  { %608 = vmatprep.subr.bf16.mxu1 %v1112_v63 }
 0x320   :  { %609 = vmatpush1.bf16.msra.mxu1 %v1110_v0 }
 0x321   :  { %610 = vmatprep.subr.bf16.mxu1 %v1115_v2 }
 0x324   :  { %611 = vmatpush1.bf16.msra.mxu1 %v1113_v1 }
 0x325   :  { %612 = vmatprep.subr.bf16.mxu1 %v1118_v3 }
 0x328   :  { %613 = vmatpush1.bf16.msra.mxu1 %v1116_v4 }
 0x329   :  { %614 = vmatprep.subr.bf16.mxu1 %v1121_v6 }
 0x32c   :  { %615 = vmatpush1.bf16.msra.mxu1 %v1119_v5 }
 0x32d   :  { %994 = vmatprep.subr.bf16.mxu1 %v1122_v7 }
 0x3e2   :  { %v380_v36 = vpop.f32.mrb[0].mxu1 }
 0x3e3   :  { %v1533_v37 = vadd.f32 %v926_v35, %v380_v36  ;;  %v1042_v38 = vpop.f32.mrb[1].mxu1  ;;  %v704_v35 = vlaneseq }
 0x3e4   :  { %v383_v39 = vpop.f32.mrb[2].mxu1 }
 0x3e5   :  { %v1043_v40 = vpop.f32.mrb[3].mxu1  ;;  %386 = vmax.xlane.f32.xlu0 %v1533_v37  ;;  %v705_v36 = vshrl.u32 %v704_v35, 7  ;;  %v702_v39 = vld [vmem:[%s1585_s12] sm:$0x3] }
 0x3e7   :  { %v706_v38 = vsub.s32 0, %v705_v36  ;;  %v710_v40 = vsub.s32 1, %v705_v36 }
 0x3e9   :  { %v707_v41 = vrot.slane %v702_v39, %v706_v38  ;;  %v711_v43 = vrot.slane %v702_v39, %v710_v40 }
 0x472   :  { %v387_v55 = vpop.xlane.xlu0 %386 }
 0x473   :  { %v388_v56 = vsub.f32 %v1533_v37, %v387_v55 }
 0x475   :  { %v389_v57 = vmul.f32 1.442695, %v388_v56  ;;  %v958_v56 = vld [vmem:[%s1587_s14] ss:$0 sm:$0xff] }
 0x477   :  { %1140 = vpow2.f32 %v389_v57 }
 0x481   :  { %v1141_v58 = vpop.eup %1140 }
 0x482   :  { %v391_v60 = vpack.c.bf16 %v1141_v58, %v1141_v58 }
 0x484   :  { %1061 = vmatmul.mubr.bf16.vlgmr.msra.gmra.mrb[12].mxu0 %v391_v60 }
 0x485   :  { %662 = vmatpush1.bf16.msra.mxu0 %v1092_v59  ;;  %693 = vmatprep.mubr.bf16.mxu0 %v1320_v46 }
 0x486   :  { %663 = vmatprep.subr.bf16.mxu0 %v1097_v61 }
 0x489   :  { %664 = vmatpush1.bf16.msra.mxu0 %v1095_v62 }
 0x48c   :  { %957 = vmatmul.mubr.msk.bf16.vlgmr.msra.gmra.mrb[16].mxu0 %vm154_vm1, %v1514_v14 }
 0x557   :  { %v490_v8 = vpop.f32.mrb[12].mxu0 }
 0x558   :  { %v496_v9 = vmax.f32 %v490_v8, 1e-30  ;;  %v1062_v10 = vpop.f32.mrb[13].mxu0 }
 0x559   :  { %v493_v11 = vpop.f32.mrb[14].mxu0 }
 0x55a   :  { %1142 = vrcp.f32 %v496_v9  ;;  %v1063_v12 = vpop.f32.mrb[15].mxu0 }
 0x55f   :  { %v695_v13 = vpop.f32.mrb[16].mxu0 }
 0x560   :  { %v697_v14 = vpop.f32.mrb[17].mxu0 }
 0x561   :  { %v699_v15 = vpop.f32.mrb[18].mxu0 }
 0x562   :  { %v700_v16 = vpop.f32.mrb[19].mxu0 }
 0x564   :  { %v1143_v17 = vpop.eup %1142 }
 0x565   :  { %v498_v18 = vmul.f32 %v1143_v17, %v1141_v58 }
 0x567   :  { %v499_v20 = vpack.c.bf16 %v498_v18, %v498_v18 }
 0x569   :  { %633 = vmatmul.mubr.bf16.vlgmr.msra.gmra.mrb[4].mxu1 %v499_v20 }
 0x56a   :  { %995 = vmatpush3.bf16.msra.mxu1 %v1123_v19 }
 0x56b   :  { %996 = vmatprep.subr.bf16.mxu1 %v1124_v21 }
 0x56e   :  { %997 = vmatpush3.bf16.msra.mxu1 %v1125_v22 }
 0x56f   :  { %998 = vmatprep.subr.bf16.mxu1 %v1126_v23 }
 0x572   :  { %999 = vmatpush3.bf16.msra.mxu1 %v1127_v24 }
 0x573   :  { %1000 = vmatprep.subr.bf16.mxu1 %v1128_v25 }
 0x576   :  { %1001 = vmatpush3.bf16.msra.mxu1 %v1129_v26 }
 0x577   :  { %1002 = vmatprep.subr.bf16.mxu1 %v1130_v27 }
 0x57a   :  { %1003 = vmatpush3.bf16.msra.mxu1 %v1131_v28 }
 0x57b   :  { %1004 = vmatprep.subr.bf16.mxu1 %v1132_v29 }
 0x57e   :  { %1005 = vmatpush3.bf16.msra.mxu1 %v1133_v30 }
 0x57f   :  { %1006 = vmatprep.subr.bf16.mxu1 %v1134_v31 }
 0x582   :  { %1007 = vmatpush3.bf16.msra.mxu1 %v1135_v32 }
 0x583   :  { %1008 = vmatprep.subr.bf16.mxu1 %v1136_v33 }
 0x586   :  { %1009 = vmatpush3.bf16.msra.mxu1 %v1137_v34 }
 0x63c   :  { %v634_v42 = vpop.f32.mrb[4].mxu1 }
 0x63d   :  { %v696_v44 = vadd.f32 %v695_v13, %v634_v42  ;;  %v636_v45 = vpop.f32.mrb[5].mxu1 }
 0x63e   :  { %v698_v46 = vadd.f32 %v697_v14, %v636_v45  ;;  %v638_v47 = vpop.f32.mrb[6].mxu1 }
 0x63f   :  { %v714_v48 = vadd.f32 %v707_v41, %v696_v44  ;;  %v639_v49 = vpop.f32.mrb[7].mxu1 }
 0x640   :  { %v715_v50 = vadd.f32 %v711_v43, %v698_v46 }
 0x641   :  { %v716_v51 = vmax.f32 %v714_v48, 0.0 }
 0x642   :  { %v717_v52 = vmax.f32 %v715_v50, 0.0 }
 0x643   :  { %v718_v54 = vpack.c.bf16 %v716_v51, %v716_v51 }
 0x644   :  { %v719_v53 = vpack.c.bf16 %v717_v52, %v717_v52 }
 0x646   :  { %887 = vmatprep.mubr.bf16.mxu1 %v719_v53 }
 0x647   :  { %888 = vmatmul.mubr.bf16.vlgmr.msra.gmra.mrb[8].mxu1 %v718_v54 }
 0x71a   :  { %v1010_v55 = vpop.f32.mrb[8].mxu1 }
 0x71b   :  { %v1011_v57 = vpop.f32.mrb[9].mxu1 }
 0x71c   :  { %v1012_v58 = vadd.f32 %v1011_v57, %v1010_v55  ;;  %v1013_v59 = vpop.f32.mrb[10].mxu1 }
 0x71d   :  { %v1014_v60 = vpop.f32.mrb[11].mxu1 }
 0x71e   :  { %v890_v61 = vadd.f32 %v1012_v58, %v958_v56 }
 0x720   :  { %v895_v62 = vadd.f32 %v890_v61, %v1533_v37 }
 0x722   :  { %896 = vst [vmem:[#allocation13] sm:$0xff] %v895_v62 }
 0x723   :  { %1287 = shalt.err (!%p1284_p10)
}
 0x724   :  { %s1591_s29 = sld [smem:[#allocation19_spill]] }
 0x72a   :  { %s1288_s16 = scalar_lea.hbm %s1591_s29, 128 }
 0x72b   :  { %p1289_p11 = scmp.ne.s32.totalorder %s1591_s29, %s1288_s16  ;;  %p1292_p12 = scmp.lt.u32.totalorder %s1288_s16, %s1591_s29 }
 0x72d   :  { %p1294_p13 = pnand %p1292_p12, %p1289_p11 }
 0x72f   :  { %1297 = shalt.err (!%p1294_p13)
}
 0x730   :  { %906 = dma.vmem_to_hbm [thread:$0]  %s904_s19, 128, %s1591_s29, [#allocation4]  }
 0x731   :  { %1306 = dma.done.wait [#allocation4], 128  }
 0x732   :  { %1307 = vsyncadd [#allocation4], 4294967168 }
 0x733   :  { %910 = vsyncpa [#allocation3], 1 }
 0x734   :  { %911 = vsyncpa [#allocation6], 1 }
 0x735   :  { %912 = vsyncpa [#allocation9], 1 }
 0x736   :  { %913 = vsyncpa [#allocation12], 1 }
 0x737   :  { %914 = vsyncpa [#allocation4], 1 }

// kernel: tpu_custom_call.1
= control target key start
LH: loop header
LB: loop body
LE: loop exit
PB: predicated region body
PF: predicated region fallthrough
CT: control target
= control target key end

     0   :  { %s1573_s0 = inlined_call_operand.hbm [shape: bf16[8,32], index: 0, kind: input, shape index: {}]   ;;  %s1574_s1 = inlined_call_operand.vmem [shape: bf16[32,32], index: 1, kind: input, shape index: {}]   ;;  %s1575_s2 = inlined_call_operand.vmem [shape: f32[1,32], index: 2, kind: input, shape index: {}]   ;;  %s1576_s3 = inlined_call_operand.vmem [shape: bf16[32,16], index: 3, kind: input, shape index: {}]   ;;  %s1577_s4 = inlined_call_operand.vmem [shape: f32[1,16], index: 4, kind: input, shape index: {}]   ;;  %s1578_s5 = inlined_call_operand.vmem [shape: bf16[16,16], index: 5, kind: input, shape index: {}]   ;;  %s1579_s6 = inlined_call_operand.vmem [shape: f32[1,16], index: 6, kind: input, shape index: {}]   ;;  %s1580_s7 = inlined_call_operand.hbm [shape: bf16[16,128], index: 7, kind: input, shape index: {}]   ;;  %s1581_s8 = inlined_call_operand.hbm [shape: f32[1,128], index: 8, kind: input, shape index: {}]   ;;  %s1582_s9 = inlined_call_operand.hbm [shape: bf16[128,128], index: 9, kind: input, shape index: {}]   ;;  %s1583_s10 = inlined_call_operand.vmem [shape: bf16[32,256], index: 10, kind: input, shape index: {}]   ;;  %s1584_s11 = inlined_call_operand.hbm [shape: bf16[128,256], index: 11, kind: input, shape index: {}]   ;;  %s1585_s12 = inlined_call_operand.vmem [shape: f32[1,256], index: 12, kind: input, shape index: {}]   ;;  %s1586_s13 = inlined_call_operand.hbm [shape: bf16[256,128], index: 13, kind: input, shape index: {}]   ;;  %s1587_s14 = inlined_call_operand.vmem [shape: f32[1,128], index: 14, kind: input, shape index: {}]   ;;  %s1588_s15 = inlined_call_operand.hbm [shape: f32[8,128], index: 15, kind: output, shape index: {}]  }
   0x1   :  { %1590 = sst [smem:[#allocation19_spill]] %s1588_s15 }
   0x2   :  { %20 = vsyncpa [#allocation3], 0 }
   0x3   :  { %21 = vsyncpa [#allocation6], 0 }
   0x4   :  { %22 = vsyncpa [#allocation9], 0 }
   0x5   :  { %23 = vsyncpa [#allocation12], 0 }
   0x6   :  { %24 = vsyncpa [#allocation4], 0  ;;  %s1308_s18 = smov [#allocation5]   ;;  %s1144_s22 = scalar_lea.hbm %s1580_s7, 128 }
   0x7   :  { %s52_s19 = sshll.u32 %s1308_s18, 4  ;;  %p1145_p0 = scmp.ne.s32.totalorder %s1580_s7, %s1144_s22  ;;  %s53_s19 = int_to_ptr.vmem [resolvable:$true] %s52_s19 }
   0x8   :  { %p1148_p1 = scmp.lt.u32.totalorder %s1144_s22, %s1580_s7 }
   0xa   :  { %p1150_p2 = pnand %p1148_p1, %p1145_p0 }
   0xc   :  { %1153 = shalt.err (!%p1150_p2)
}
   0xd   :  { %s1154_s27 = scalar_lea.vmem %s53_s19, 128  ;;  %p1159_p4 = scmp.lt.s32.totalorder %s53_s19, %s53_s19 }
   0xe   :  { %p1155_p3 = scmp.ne.s32.totalorder %s53_s19, %s1154_s27  ;;  %p1160_p5 = scmp.lt.s32.totalorder %s1154_s27, %s1154_s27 }
  0x10   :  { %p1161_p6 = por %p1160_p5, %p1159_p4 }
  0x12   :  { %p1162_p7 = pnand %p1161_p6, %p1155_p3 }
  0x14   :  { %1165 = shalt.err (!%p1162_p7)
}
  0x15   :  { %s1309_s28 = smov 64   ;;  %s1310_s29 = smov 4  }
  0x16   :  { %58 = dma.hbm_to_vmem [thread:$0]  %s1580_s7, 128, %s53_s19, [#allocation6], %s1309_s28, %s1309_s28, %s1310_s29  }
  0x17   :  { %s1311_s17 = smov [#allocation8]   ;;  %s1312_s20 = smov [#allocation2]  }
  0x18   :  { %s74_s18 = sshll.u32 %s1311_s17, 4  ;;  %s31_s21 = sshll.u32 %s1312_s20, 4  ;;  %s75_s18 = int_to_ptr.vmem [resolvable:$true] %s74_s18  ;;  %s32_s21 = int_to_ptr.vmem [resolvable:$true] %s31_s21 }
  0x19   :  { %s1166_s24 = scalar_lea.hbm %s1582_s9, 1024 }
  0x1a   :  { %p1167_p8 = scmp.ne.s32.totalorder %s1582_s9, %s1166_s24  ;;  %p1170_p9 = scmp.lt.u32.totalorder %s1166_s24, %s1582_s9 }
  0x1c   :  { %p1172_p10 = pnand %p1170_p9, %p1167_p8 }
  0x1e   :  { %1175 = shalt.err (!%p1172_p10)
}
  0x1f   :  { %s1176_s7 = scalar_lea.vmem %s75_s18, 1024  ;;  %p1181_p12 = scmp.lt.s32.totalorder %s75_s18, %s75_s18 }
  0x20   :  { %p1177_p11 = scmp.ne.s32.totalorder %s75_s18, %s1176_s7  ;;  %p1182_p13 = scmp.lt.s32.totalorder %s1176_s7, %s1176_s7 }
  0x22   :  { %p1183_p0 = por %p1182_p13, %p1181_p12 }
  0x24   :  { %p1184_p1 = pnand %p1183_p0, %p1177_p11 }
  0x26   :  { %1187 = shalt.err (!%p1184_p1)
}
  0x27   :  { %80 = dma.hbm_to_vmem [thread:$0]  %s1582_s9, 1024, %s75_s18, [#allocation9], %s1309_s28, %s1309_s28, %s1310_s29  }
  0x28   :  { %s1188_s17 = scalar_lea.hbm %s1573_s0, 64 }
  0x29   :  { %p1189_p2 = scmp.ne.s32.totalorder %s1573_s0, %s1188_s17  ;;  %p1192_p3 = scmp.lt.u32.totalorder %s1188_s17, %s1573_s0 }
  0x2b   :  { %p1194_p4 = pnand %p1192_p3, %p1189_p2 }
  0x2d   :  { %1197 = shalt.err (!%p1194_p4)
}
  0x2e   :  { %s1198_s25 = scalar_lea.vmem %s32_s21, 64  ;;  %p1203_p6 = scmp.lt.s32.totalorder %s32_s21, %s32_s21 }
  0x2f   :  { %p1199_p5 = scmp.ne.s32.totalorder %s32_s21, %s1198_s25  ;;  %p1204_p7 = scmp.lt.s32.totalorder %s1198_s25, %s1198_s25 }
  0x31   :  { %p1205_p8 = por %p1204_p7, %p1203_p6 }
  0x33   :  { %p1206_p9 = pnand %p1205_p8, %p1199_p5 }
  0x35   :  { %1209 = shalt.err (!%p1206_p9)
}
  0x36   :  { %34 = dma.hbm_to_vmem [thread:$0]  %s1573_s0, 64, %s32_s21, [#allocation3]  }
  0x37   :  { %s1313_s26 = smov [#allocation7]   ;;  %s1314_s7 = smov [#allocation10]  }
  0x38   :  { %s65_s27 = sshll.u32 %s1313_s26, 4  ;;  %s88_s19 = sshll.u32 %s1314_s7, 4  ;;  %s66_s27 = int_to_ptr.vmem [resolvable:$true] %s65_s27  ;;  %s89_s19 = int_to_ptr.vmem [resolvable:$true] %s88_s19 }
  0x39   :  { %s1210_s15 = scalar_lea.hbm %s1581_s8, 16 }
  0x3a   :  { %p1211_p10 = scmp.ne.s32.totalorder %s1581_s8, %s1210_s15  ;;  %p1214_p11 = scmp.lt.u32.totalorder %s1210_s15, %s1581_s8 }
  0x3c   :  { %p1216_p12 = pnand %p1214_p11, %p1211_p10 }
  0x3e   :  { %1219 = shalt.err (!%p1216_p12)
}
  0x3f   :  { %s1220_s0 = scalar_lea.vmem %s66_s27, 16  ;;  %s1224_s21 = scalar_lea.vmem %s66_s27, 32 }
  0x40   :  { %p1221_p13 = scmp.ne.s32.totalorder %s66_s27, %s1220_s0  ;;  %p1225_p0 = scmp.lt.s32.totalorder %s66_s27, %s66_s27 }
  0x41   :  { %p1226_p1 = scmp.lt.s32.totalorder %s1224_s21, %s1220_s0 }
  0x43   :  { %p1227_p2 = por %p1226_p1, %p1225_p0 }
  0x45   :  { %p1228_p3 = pnand %p1227_p2, %p1221_p13 }
  0x47   :  { %1231 = shalt.err (!%p1228_p3)
}
  0x48   :  { %68 = dma.hbm_to_vmem [thread:$0]  %s1581_s8, 16, %s66_s27, [#allocation6]  }
  0x49   :  { %s1232_s26 = scalar_lea.hbm %s1584_s11, 2048 }
  0x4a   :  { %p1233_p4 = scmp.ne.s32.totalorder %s1584_s11, %s1232_s26  ;;  %p1236_p5 = scmp.lt.u32.totalorder %s1232_s26, %s1584_s11 }
  0x4c   :  { %p1238_p6 = pnand %p1236_p5, %p1233_p4 }
  0x4e   :  { %1241 = shalt.err (!%p1238_p6)
}
  0x4f   :  { %s1242_s17 = scalar_lea.vmem %s89_s19, 2048  ;;  %p1247_p8 = scmp.lt.s32.totalorder %s89_s19, %s89_s19 }
  0x50   :  { %p1243_p7 = scmp.ne.s32.totalorder %s89_s19, %s1242_s17  ;;  %p1248_p9 = scmp.lt.s32.totalorder %s1242_s17, %s1242_s17 }
  0x52   :  { %p1249_p10 = por %p1248_p9, %p1247_p8 }
  0x54   :  { %p1250_p11 = pnand %p1249_p10, %p1243_p7 }
  0x56   :  { %1253 = shalt.err (!%p1250_p11)
}
  0x57   :  { %s1315_s8 = smov 128   ;;  %s1316_s27 = smov 8  }
  0x58   :  { %94 = dma.hbm_to_vmem [thread:$0]  %s1584_s11, 2048, %s89_s19, [#allocation9], %s1315_s8, %s1315_s8, %s1316_s27  }
  0x59   :  { %s1317_s23 = smov [#allocation11]   ;;  %s1254_s25 = scalar_lea.hbm %s1586_s13, 2048 }
  0x5a   :  { %s102_s0 = sshll.u32 %s1317_s23, 4  ;;  %p1255_p12 = scmp.ne.s32.totalorder %s1586_s13, %s1254_s25  ;;  %s103_s0 = int_to_ptr.vmem [resolvable:$true] %s102_s0 }
  0x5b   :  { %p1258_p13 = scmp.lt.u32.totalorder %s1254_s25, %s1586_s13 }
  0x5d   :  { %p1260_p0 = pnand %p1258_p13, %p1255_p12 }
  0x5f   :  { %1263 = shalt.err (!%p1260_p0)
}
  0x60   :  { %s1264_s30 = scalar_lea.vmem %s103_s0, 2048  ;;  %p1269_p2 = scmp.lt.s32.totalorder %s103_s0, %s103_s0 }
  0x61   :  { %p1265_p1 = scmp.ne.s32.totalorder %s103_s0, %s1264_s30  ;;  %p1270_p3 = scmp.lt.s32.totalorder %s1264_s30, %s1264_s30 }
  0x63   :  { %p1271_p4 = por %p1270_p3, %p1269_p2 }
  0x65   :  { %p1272_p5 = pnand %p1271_p4, %p1265_p1 }
  0x67   :  { %1275 = shalt.err (!%p1272_p5)
}
  0x68   :  { %108 = dma.hbm_to_vmem [thread:$0]  %s1586_s13, 2048, %s103_s0, [#allocation12], %s1309_s28, %s1309_s28, %s1310_s29  }
  0x69   :  { %1298 = dma.done.wait [#allocation3], 64  }
  0x6a   :  { %1299 = vsyncadd [#allocation3], 4294967232 }
  0x6b   :  { %1300 = dma.done.wait [#allocation6], 144  }
  0x6c   :  { %1301 = vsyncadd [#allocation6], 4294967152 }
  0x6d   :  { %1302 = dma.done.wait [#allocation9], 3072  }
  0x6e   :  { %1303 = vsyncadd [#allocation9], 4294964224 }
  0x6f   :  { %1304 = dma.done.wait [#allocation12], 2048  }
  0x70   :  { %1305 = vsyncadd [#allocation12], 4294965248  ;;  %v1318_v0 = vmov 0.0   ;;  %vm1319_vm0 = vmmov 0   ;;  %v1078_v1 = vld [vmem:[%s1574_s1] sm:$0xff]   ;;  %v1079_v2 = vld [vmem:[%s1574_s1 + $0x8] sm:$0xff]  }
  0x71   :  { %1016 = vmatprep.subr.bf16.mxu0 %v1318_v0  ;;  %1020 = vmatprep.mubr.msk.bf16.mxu0 %vm1319_vm0, %v1318_v0  ;;  %vm154_vm1 = vcmask 261120   ;;  %v130_v3 = vld [vmem:[#allocation2] sm:$0xf]  ;;  %v1081_v5 = vld [vmem:[%s1576_s3 + $0x8] sm:$0xff]   ;;  %vm283_vm2 = vcmask 130048   ;;  %v1085_v32 = vld [vmem:[#allocation8 + $0x8] sm:$0xff]  }
  0x72   :  { %1038 = vmatprep.subr.bf16.mxu1 %v1318_v0  ;;  %1040 = vmatprep.mubr.msk.bf16.mxu1 %vm1319_vm0, %v1318_v0  ;;  %v1080_v4 = vld [vmem:[%s1576_s3] sm:$0xff]   ;;  %v1084_v31 = vld [vmem:[#allocation8] sm:$0xff]   ;;  %v926_v35 = vld [vmem:[#allocation7] ss:$0 sm:$0xff]  ;;  %v1320_v46 = vmov 0   ;;  %s1321_s11 = smov [#allocation13]  }
  0x73   :  { %1017 = vmatpush3.bf16.msra.mxu0 %v1078_v1  ;;  %v915_v6 = vld [vmem:[%s1575_s2] ss:$0 sm:$0xff]  ;;  %v1083_v23 = vld [vmem:[#allocation5] sm:$0xff]   ;;  %v1088_v41 = vld [vmem:[#allocation8 + $0x20] sm:$0xff]   ;;  %s903_s19 = sshll.u32 %s1321_s11, 4  ;;  %s904_s19 = int_to_ptr.vmem [resolvable:$true] %s903_s19 }
  0x74   :  { %1018 = vmatprep.subr.bf16.mxu0 %v1318_v0  ;;  %v1082_v13 = vld [vmem:[%s1578_s5] sm:$0xff]   ;;  %1039 = vmatpush3.bf16.msra.mxu1 %v1083_v23  ;;  %v1089_v42 = vld [vmem:[#allocation8 + $0x28] sm:$0xff]   ;;  %s1276_s13 = scalar_lea.vmem %s904_s19, 128  ;;  %p1281_p7 = scmp.lt.s32.totalorder %s904_s19, %s904_s19 }
  0x75   :  { %v919_v15 = vld [vmem:[%s1577_s4] ss:$0 sm:$0xff]  ;;  %v1087_v34 = vld [vmem:[#allocation8 + $0x18] sm:$0xff]   ;;  %v1098_v47 = vld [vmem:[#allocation10] ss:$8 sps:$4 sm:$0xff]   ;;  %p1277_p6 = scmp.ne.s32.totalorder %s904_s19, %s1276_s13  ;;  %p1282_p8 = scmp.lt.s32.totalorder %s1276_s13, %s1276_s13 }
  0x76   :  { %v923_v24 = vld [vmem:[%s1579_s6] ss:$0 sm:$0xff]  ;;  %v1091_v44 = vld [vmem:[#allocation8 + $0x38] sm:$0xff]   ;;  %v1100_v48 = vld [vmem:[#allocation10 + $0x4] ss:$8 sps:$4 sm:$0xff]  }
  0x77   :  { %1019 = vmatpush3.bf16.msra.mxu0 %v1079_v2  ;;  %v1086_v33 = vld [vmem:[#allocation8 + $0x10] sm:$0xff]   ;;  %600 = vmatprep.subr.bf16.mxu1 %v1100_v48  ;;  %v1106_v51 = vld [vmem:[#allocation10 + $0x24] ss:$8 sps:$4 sm:$0xff]   ;;  %v1104_v52 = vld [vmem:[#allocation10 + $0x20] ss:$8 sps:$4 sm:$0xff]   ;;  %p1283_p9 = por %p1282_p8, %p1281_p7 }
  0x78   :  { %1024 = vmatprep.subr.bf16.mxu0 %v1318_v0  ;;  %v1090_v43 = vld [vmem:[#allocation8 + $0x30] sm:$0xff]   ;;  %v1095_v62 = vld [vmem:[%s1583_s10 + $0x10] ss:$8 sps:$4 sm:$0xff]  }
  0x79   :  { %v1094_v45 = vld [vmem:[%s1583_s10 + $0x4] ss:$8 sps:$4 sm:$0xff]   ;;  %v1092_v59 = vld [vmem:[%s1583_s10] ss:$8 sps:$4 sm:$0xff]   ;;  %v1097_v61 = vld [vmem:[%s1583_s10 + $0x14] ss:$8 sps:$4 sm:$0xff]   ;;  %p1284_p10 = pnand %p1283_p9, %p1277_p6 }
  0x7a   :  { %1021 = vmatmul.mubr.msk.bf16.vlgmr.msra.gmra.mrb[0].mxu0 %vm154_vm1, %v130_v3  ;;  %v1103_v49 = vld [vmem:[#allocation10 + $0x14] ss:$8 sps:$4 sm:$0xff]   ;;  %v1101_v50 = vld [vmem:[#allocation10 + $0x10] ss:$8 sps:$4 sm:$0xff]   ;;  %v1112_v63 = vld [vmem:[#allocation10 + $0x44] ss:$8 sps:$4 sm:$0xff]  }
  0x7b   :  { %1028 = vmatprep.mubr.msk.bf16.mxu0 %vm1319_vm0, %v1318_v0  ;;  %1025 = vmatpush3.bf16.msra.mxu0 %v1080_v4  ;;  %v1109_v53 = vld [vmem:[#allocation10 + $0x34] ss:$8 sps:$4 sm:$0xff]   ;;  %v1107_v54 = vld [vmem:[#allocation10 + $0x30] ss:$8 sps:$4 sm:$0xff]   ;;  %v1118_v3 = vld [vmem:[#allocation10 + $0x64] ss:$8 sps:$4 sm:$0xff]  }
  0x7c   :  { %1026 = vmatprep.subr.bf16.mxu0 %v1318_v0  ;;  %v1113_v1 = vld [vmem:[#allocation10 + $0x50] ss:$8 sps:$4 sm:$0xff]   ;;  %v1115_v2 = vld [vmem:[#allocation10 + $0x54] ss:$8 sps:$4 sm:$0xff]   ;;  %v1116_v4 = vld [vmem:[#allocation10 + $0x60] ss:$8 sps:$4 sm:$0xff]  }
  0x7d   :  { %v1126_v23 = vld [vmem:[#allocation11 + $0x50] sm:$0xff]  }
  0x7f   :  { %1027 = vmatpush3.bf16.msra.mxu0 %v1081_v5  ;;  %v1119_v5 = vld [vmem:[#allocation10 + $0x70] ss:$8 sps:$4 sm:$0xff]  }
  0x80   :  { %1032 = vmatprep.subr.bf16.mxu0 %v1318_v0 }
 0x14d   :  { %v192_v7 = vpop.f32.mrb[0].mxu0 }
 0x14e   :  { %v193_v8 = vadd.f32 %v915_v6, %v192_v7  ;;  %v1022_v9 = vpop.f32.mrb[1].mxu0  ;;  %v1121_v6 = vld [vmem:[#allocation10 + $0x74] ss:$8 sps:$4 sm:$0xff]   ;;  %v1122_v7 = vld [vmem:[#allocation11 + $0x40] sm:$0xff]  }
 0x14f   :  { %v195_v10 = vpop.f32.mrb[2].mxu0 }
 0x150   :  { %1138 = vtanh.f32 %v193_v8  ;;  %v1023_v11 = vpop.f32.mrb[3].mxu0 }
 0x15a   :  { %v1139_v12 = vpop.eup %1138 }
 0x15b   :  { %v1514_v14 = vpack.c.bf16 %v1139_v12, %v1139_v12 }
 0x15d   :  { %1029 = vmatmul.mubr.msk.bf16.vlgmr.msra.gmra.mrb[4].mxu0 %vm154_vm1, %v1514_v14 }
 0x15e   :  { %1033 = vmatpush3.bf16.msra.mxu0 %v1082_v13  ;;  %1034 = vmatprep.mubr.msk.bf16.mxu0 %vm1319_vm0, %v1318_v0 }
 0x15f   :  { %1044 = vmatprep.subr.bf16.mxu0 %v1318_v0 }
 0x230   :  { %v260_v16 = vpop.f32.mrb[4].mxu0 }
 0x231   :  { %v261_v17 = vadd.f32 %v919_v15, %v260_v16  ;;  %v1030_v18 = vpop.f32.mrb[5].mxu0 }
 0x232   :  { %v263_v19 = vpop.f32.mrb[6].mxu0 }
 0x233   :  { %v266_v20 = vmax.f32 %v261_v17, 0.0  ;;  %v1031_v21 = vpop.f32.mrb[7].mxu0  ;;  %v1123_v19 = vld [vmem:[#allocation11] sm:$0xff]  }
 0x234   :  { %v1124_v21 = vld [vmem:[#allocation11 + $0x48] sm:$0xff]  }
 0x235   :  { %v267_v22 = vpack.c.bf16 %v266_v20, %v266_v20 }
 0x237   :  { %1035 = vmatmul.mubr.msk.bf16.vlgmr.msra.gmra.mrb[8].mxu0 %vm283_vm2, %v267_v22  ;;  %v1125_v22 = vld [vmem:[#allocation11 + $0x8] sm:$0xff]  }
 0x238   :  { %1060 = vmatprep.mubr.msk.bf16.mxu0 %vm1319_vm0, %v1318_v0  ;;  %1045 = vmatpush3.bf16.msra.mxu0 %v1084_v31  ;;  %v1134_v31 = vld [vmem:[#allocation11 + $0x70] sm:$0xff]  }
 0x239   :  { %1046 = vmatprep.subr.bf16.mxu0 %v1318_v0 }
 0x23c   :  { %1047 = vmatpush3.bf16.msra.mxu0 %v1085_v32  ;;  %v1135_v32 = vld [vmem:[#allocation11 + $0x30] sm:$0xff]  }
 0x23d   :  { %1048 = vmatprep.subr.bf16.mxu0 %v1318_v0 }
 0x240   :  { %1049 = vmatpush3.bf16.msra.mxu0 %v1086_v33  ;;  %v1136_v33 = vld [vmem:[#allocation11 + $0x78] sm:$0xff]  }
 0x241   :  { %1050 = vmatprep.subr.bf16.mxu0 %v1318_v0 }
 0x244   :  { %1051 = vmatpush3.bf16.msra.mxu0 %v1087_v34  ;;  %v1137_v34 = vld [vmem:[#allocation11 + $0x38] sm:$0xff]  }
 0x245   :  { %1052 = vmatprep.subr.bf16.mxu0 %v1318_v0 }
 0x248   :  { %1053 = vmatpush3.bf16.msra.mxu0 %v1088_v41 }
 0x249   :  { %1054 = vmatprep.subr.bf16.mxu0 %v1318_v0 }
 0x24c   :  { %1055 = vmatpush3.bf16.msra.mxu0 %v1089_v42 }
 0x24d   :  { %1056 = vmatprep.subr.bf16.mxu0 %v1318_v0 }
 0x250   :  { %1057 = vmatpush3.bf16.msra.mxu0 %v1090_v43 }
 0x251   :  { %1058 = vmatprep.subr.bf16.mxu0 %v1318_v0  ;;  %v1110_v0 = vld [vmem:[#allocation10 + $0x40] ss:$8 sps:$4 sm:$0xff]  }
 0x254   :  { %1059 = vmatpush3.bf16.msra.mxu0 %v1091_v44 }
 0x255   :  { %661 = vmatprep.subr.bf16.mxu0 %v1094_v45 }
 0x30a   :  { %v321_v25 = vpop.f32.mrb[8].mxu0 }
 0x30b   :  { %v322_v26 = vadd.f32 %v923_v24, %v321_v25  ;;  %v1036_v27 = vpop.f32.mrb[9].mxu0  ;;  %v1127_v24 = vld [vmem:[#allocation11 + $0x10] sm:$0xff]   ;;  %v1128_v25 = vld [vmem:[#allocation11 + $0x58] sm:$0xff]  }
 0x30c   :  { %v324_v28 = vpop.f32.mrb[10].mxu0  ;;  %v1130_v27 = vld [vmem:[#allocation11 + $0x60] sm:$0xff]  }
 0x30d   :  { %v327_v29 = vpack.c.bf16 %v322_v26, %v322_v26  ;;  %v1037_v30 = vpop.f32.mrb[11].mxu0  ;;  %v1129_v26 = vld [vmem:[#allocation11 + $0x18] sm:$0xff]   ;;  %v1131_v28 = vld [vmem:[#allocation11 + $0x20] sm:$0xff]  }
 0x30e   :  { %v1133_v30 = vld [vmem:[#allocation11 + $0x28] sm:$0xff]  }
 0x30f   :  { %1041 = vmatmul.mubr.msk.bf16.vlgmr.msra.gmra.mrb[0].mxu1 %vm283_vm2, %v327_v29  ;;  %v1132_v29 = vld [vmem:[#allocation11 + $0x68] sm:$0xff]  }
 0x310   :  { %632 = vmatprep.mubr.bf16.mxu1 %v1320_v46  ;;  %601 = vmatpush1.bf16.msra.mxu1 %v1098_v47 }
 0x311   :  { %602 = vmatprep.subr.bf16.mxu1 %v1103_v49 }
 0x314   :  { %603 = vmatpush1.bf16.msra.mxu1 %v1101_v50 }
 0x315   :  { %604 = vmatprep.subr.bf16.mxu1 %v1106_v51 }
 0x318   :  { %605 = vmatpush1.bf16.msra.mxu1 %v1104_v52 }
 0x319   :  { %606 = vmatprep.subr.bf16.mxu1 %v1109_v53 }
 0x31c   :  { %607 = vmatpush1.bf16.msra.mxu1 %v1107_v54 }
 0x31d   :  { %608 = vmatprep.subr.bf16.mxu1 %v1112_v63 }
 0x320   :  { %609 = vmatpush1.bf16.msra.mxu1 %v1110_v0 }
 0x321   :  { %610 = vmatprep.subr.bf16.mxu1 %v1115_v2 }
 0x324   :  { %611 = vmatpush1.bf16.msra.mxu1 %v1113_v1 }
 0x325   :  { %612 = vmatprep.subr.bf16.mxu1 %v1118_v3 }
 0x328   :  { %613 = vmatpush1.bf16.msra.mxu1 %v1116_v4 }
 0x329   :  { %614 = vmatprep.subr.bf16.mxu1 %v1121_v6 }
 0x32c   :  { %615 = vmatpush1.bf16.msra.mxu1 %v1119_v5 }
 0x32d   :  { %994 = vmatprep.subr.bf16.mxu1 %v1122_v7 }
 0x3e2   :  { %v380_v36 = vpop.f32.mrb[0].mxu1 }
 0x3e3   :  { %v1533_v37 = vadd.f32 %v926_v35, %v380_v36  ;;  %v1042_v38 = vpop.f32.mrb[1].mxu1  ;;  %v704_v35 = vlaneseq }
 0x3e4   :  { %v383_v39 = vpop.f32.mrb[2].mxu1 }
 0x3e5   :  { %v1043_v40 = vpop.f32.mrb[3].mxu1  ;;  %386 = vmax.xlane.f32.xlu0 %v1533_v37  ;;  %v705_v36 = vshrl.u32 %v704_v35, 7  ;;  %v702_v39 = vld [vmem:[%s1585_s12] sm:$0x3] }
 0x3e7   :  { %v706_v38 = vsub.s32 0, %v705_v36  ;;  %v710_v40 = vsub.s32 1, %v705_v36 }
 0x3e9   :  { %v707_v41 = vrot.slane %v702_v39, %v706_v38  ;;  %v711_v43 = vrot.slane %v702_v39, %v710_v40 }
 0x472   :  { %v387_v55 = vpop.xlane.xlu0 %386 }
 0x473   :  { %v388_v56 = vsub.f32 %v1533_v37, %v387_v55 }
 0x475   :  { %v389_v57 = vmul.f32 1.442695, %v388_v56  ;;  %v958_v56 = vld [vmem:[%s1587_s14] ss:$0 sm:$0xff] }
 0x477   :  { %1140 = vpow2.f32 %v389_v57 }
 0x481   :  { %v1141_v58 = vpop.eup %1140 }
 0x482   :  { %v391_v60 = vpack.c.bf16 %v1141_v58, %v1141_v58 }
 0x484   :  { %1061 = vmatmul.mubr.bf16.vlgmr.msra.gmra.mrb[12].mxu0 %v391_v60 }
 0x485   :  { %662 = vmatpush1.bf16.msra.mxu0 %v1092_v59  ;;  %693 = vmatprep.mubr.bf16.mxu0 %v1320_v46 }
 0x486   :  { %663 = vmatprep.subr.bf16.mxu0 %v1097_v61 }
 0x489   :  { %664 = vmatpush1.bf16.msra.mxu0 %v1095_v62 }
 0x48c   :  { %957 = vmatmul.mubr.msk.bf16.vlgmr.msra.gmra.mrb[16].mxu0 %vm154_vm1, %v1514_v14 }
 0x557   :  { %v490_v8 = vpop.f32.mrb[12].mxu0 }
 0x558   :  { %v496_v9 = vmax.f32 %v490_v8, 1e-30  ;;  %v1062_v10 = vpop.f32.mrb[13].mxu0 }
 0x559   :  { %v493_v11 = vpop.f32.mrb[14].mxu0 }
 0x55a   :  { %1142 = vrcp.f32 %v496_v9  ;;  %v1063_v12 = vpop.f32.mrb[15].mxu0 }
 0x55f   :  { %v695_v13 = vpop.f32.mrb[16].mxu0 }
 0x560   :  { %v697_v14 = vpop.f32.mrb[17].mxu0 }
 0x561   :  { %v699_v15 = vpop.f32.mrb[18].mxu0 }
 0x562   :  { %v700_v16 = vpop.f32.mrb[19].mxu0 }
 0x564   :  { %v1143_v17 = vpop.eup %1142 }
 0x565   :  { %v498_v18 = vmul.f32 %v1143_v17, %v1141_v58 }
 0x567   :  { %v499_v20 = vpack.c.bf16 %v498_v18, %v498_v18 }
 0x569   :  { %633 = vmatmul.mubr.bf16.vlgmr.msra.gmra.mrb[4].mxu1 %v499_v20 }
 0x56a   :  { %995 = vmatpush3.bf16.msra.mxu1 %v1123_v19 }
 0x56b   :  { %996 = vmatprep.subr.bf16.mxu1 %v1124_v21 }
 0x56e   :  { %997 = vmatpush3.bf16.msra.mxu1 %v1125_v22 }
 0x56f   :  { %998 = vmatprep.subr.bf16.mxu1 %v1126_v23 }
 0x572   :  { %999 = vmatpush3.bf16.msra.mxu1 %v1127_v24 }
 0x573   :  { %1000 = vmatprep.subr.bf16.mxu1 %v1128_v25 }
 0x576   :  { %1001 = vmatpush3.bf16.msra.mxu1 %v1129_v26 }
 0x577   :  { %1002 = vmatprep.subr.bf16.mxu1 %v1130_v27 }
 0x57a   :  { %1003 = vmatpush3.bf16.msra.mxu1 %v1131_v28 }
 0x57b   :  { %1004 = vmatprep.subr.bf16.mxu1 %v1132_v29 }
 0x57e   :  { %1005 = vmatpush3.bf16.msra.mxu1 %v1133_v30 }
 0x57f   :  { %1006 = vmatprep.subr.bf16.mxu1 %v1134_v31 }
 0x582   :  { %1007 = vmatpush3.bf16.msra.mxu1 %v1135_v32 }
 0x583   :  { %1008 = vmatprep.subr.bf16.mxu1 %v1136_v33 }
 0x586   :  { %1009 = vmatpush3.bf16.msra.mxu1 %v1137_v34 }
 0x63c   :  { %v634_v42 = vpop.f32.mrb[4].mxu1 }
 0x63d   :  { %v696_v44 = vadd.f32 %v695_v13, %v634_v42  ;;  %v636_v45 = vpop.f32.mrb[5].mxu1 }
 0x63e   :  { %v698_v46 = vadd.f32 %v697_v14, %v636_v45  ;;  %v638_v47 = vpop.f32.mrb[6].mxu1 }
 0x63f   :  { %v714_v48 = vadd.f32 %v707_v41, %v696_v44  ;;  %v639_v49 = vpop.f32.mrb[7].mxu1 }
 0x640   :  { %v715_v50 = vadd.f32 %v711_v43, %v698_v46 }
 0x641   :  { %v716_v51 = vmax.f32 %v714_v48, 0.0 }
 0x642   :  { %v717_v52 = vmax.f32 %v715_v50, 0.0 }
 0x643   :  { %v718_v54 = vpack.c.bf16 %v716_v51, %v716_v51 }
 0x644   :  { %v719_v53 = vpack.c.bf16 %v717_v52, %v717_v52 }
 0x646   :  { %887 = vmatprep.mubr.bf16.mxu1 %v719_v53 }
 0x647   :  { %888 = vmatmul.mubr.bf16.vlgmr.msra.gmra.mrb[8].mxu1 %v718_v54 }
 0x71a   :  { %v1010_v55 = vpop.f32.mrb[8].mxu1 }
 0x71b   :  { %v1011_v57 = vpop.f32.mrb[9].mxu1 }
 0x71c   :  { %v1012_v58 = vadd.f32 %v1011_v57, %v1010_v55  ;;  %v1013_v59 = vpop.f32.mrb[10].mxu1 }
 0x71d   :  { %v1014_v60 = vpop.f32.mrb[11].mxu1 }
 0x71e   :  { %v890_v61 = vadd.f32 %v1012_v58, %v958_v56 }
 0x720   :  { %v895_v62 = vadd.f32 %v890_v61, %v1533_v37 }
 0x722   :  { %896 = vst [vmem:[#allocation13] sm:$0xff] %v895_v62 }
 0x723   :  { %1287 = shalt.err (!%p1284_p10)
}
 0x724   :  { %s1591_s29 = sld [smem:[#allocation19_spill]] }
 0x72a   :  { %s1288_s16 = scalar_lea.hbm %s1591_s29, 128 }
 0x72b   :  { %p1289_p11 = scmp.ne.s32.totalorder %s1591_s29, %s1288_s16  ;;  %p1292_p12 = scmp.lt.u32.totalorder %s1288_s16, %s1591_s29 }
 0x72d   :  { %p1294_p13 = pnand %p1292_p12, %p1289_p11 }
 0x72f   :  { %1297 = shalt.err (!%p1294_p13)
}
 0x730   :  { %906 = dma.vmem_to_hbm [thread:$0]  %s904_s19, 128, %s1591_s29, [#allocation4]  }
 0x731   :  { %1306 = dma.done.wait [#allocation4], 128  }
 0x732   :  { %1307 = vsyncadd [#allocation4], 4294967168 }
 0x733   :  { %910 = vsyncpa [#allocation3], 1 }
 0x734   :  { %911 = vsyncpa [#allocation6], 1 }
 0x735   :  { %912 = vsyncpa [#allocation9], 1 }
 0x736   :  { %913 = vsyncpa [#allocation12], 1 }
 0x737   :  { %914 = vsyncpa [#allocation4], 1 }

</bundles_post_ra>
